<compile_context>
chip_gen: v7x
topology: tpu7x:2x2x1
jax: 0.10.0
libtpu: 0.0.40
codegen_flags: <defaults>
</compile_context>

<pallas_src>
import functools
import math

import jax
import jax.numpy as jnp
from jax import lax
from jax.experimental import pallas as pl
from jax.experimental.pallas import tpu as pltpu


def _round_up(x, m):
    return (x + m - 1) // m * m


# ----------------------------- Pallas kernel --------------------------------
def encoder_stack_kernel(x_ref, cc_ref, aar_ref, aai_ref, wr_ref, wi_ref,
                         gamma_ref, beta_ref, out_ref, x_scr,
                         *, f_pad, true_h, eps, emit_all):
    layer = pl.program_id(1)
    last = pl.num_programs(1) - 1

    # Load the fresh input once per batch row; afterwards the running
    # activation is carried in VMEM across the (sequential) layer axis.
    @pl.when(layer == 0)
    def _():
        x_scr[...] = x_ref[0]

    x = x_scr[...]                                          # (Lp, Hp) f32

    # rfft via stacked cos/sin basis: (2Fp, Lp) @ (Lp, Hp) -> (2Fp, Hp) f32.
    xx = jnp.dot(cc_ref[...], x.astype(jnp.bfloat16),
                 preferred_element_type=jnp.float32)
    xr = xx[:f_pad]
    xi = xx[f_pad:]

    # Complex multiply by the learned per-frequency filter (f32, VPU).
    wr = wr_ref[...].astype(jnp.float32)
    wi = wi_ref[...].astype(jnp.float32)
    yr = xr * wr - xi * wi
    yi = xr * wi + xi * wr

    # irfft as two accumulating matmuls (no concat temporary):
    # (Lp, Fp) @ (Fp, Hp)  +  (Lp, Fp) @ (Fp, Hp)  -> (Lp, Hp) f32.
    y = jnp.dot(aar_ref[...], yr.astype(jnp.bfloat16),
                preferred_element_type=jnp.float32)
    y = y + jnp.dot(aai_ref[...], yi.astype(jnp.bfloat16),
                    preferred_element_type=jnp.float32)

    # TODO(synk): dropout treated as identity (inference / eval mode).
    z = y + x                                               # residual (f32)

    # TF-style LayerNorm over the true hidden width.  Padded H columns of z
    # are zero, so sum(z)/true_h is the exact mean; the variance is computed
    # two-pass on the masked (z - u) to avoid E[z^2]-u^2 cancellation.
    inv_h = jnp.float32(1.0 / true_h)
    u = jnp.sum(z, axis=-1, keepdims=True) * inv_h
    col = lax.broadcasted_iota(jnp.int32, (1, z.shape[-1]), 1)
    d = (z - u) * (col < true_h).astype(jnp.float32)
    var = jnp.sum(d * d, axis=-1, keepdims=True) * inv_h
    zn = d * lax.rsqrt(var + eps)
    out = gamma_ref[...] * zn + beta_ref[...]               # padded cols -> 0

    # Carry to the next layer (skip the redundant store on the last layer).
    @pl.when(layer < last)
    def _():
        x_scr[...] = out

    if emit_all:
        out_ref[0, 0] = out.astype(out_ref.dtype)
    else:
        @pl.when(layer == last)
        def _():
            out_ref[0, 0] = out.astype(out_ref.dtype)


# --------------------------- basis construction -----------------------------
def make_padded_dft_bases(seq_len, l_pad, f_pad):
    """Ortho rfft / irfft bases, zero-padded, in bf16.

    Returns: cc (2Fp, Lp) = [cos; -sin] rfft basis, aar/aai (Lp, Fp) = irfft
    weights for the real / imaginary halves.  The imaginary (sin) rows of the
    DC and Nyquist bins are zeroed exactly, matching the c2r transform which
    ignores the imaginary part of those bins.
    """
    L = seq_len
    F = L // 2 + 1
    t = jnp.arange(L, dtype=jnp.float32)
    f = jnp.arange(F, dtype=jnp.float32)
    ang = 2.0 * math.pi * f[:, None] * t[None, :] / L       # (F, L)
    scale = 1.0 / math.sqrt(L)
    cr = jnp.cos(ang) * scale                               # Re{rfft}
    ci = -jnp.sin(ang) * scale                              # Im{rfft}
    ci = ci.at[0, :].set(0.0)                               # DC bin: exact 0
    if L % 2 == 0:
        ci = ci.at[L // 2, :].set(0.0)                      # Nyquist: exact 0
    # irfft weights: interior frequencies counted twice (Hermitian mirror).
    s_f = jnp.where((f == 0) | ((L % 2 == 0) & (f == L // 2)), 1.0, 2.0)
    art = (cr * s_f[:, None]).T                             # (L, F)
    ait = (ci * s_f[:, None]).T                             # (L, F), DC/Nyq=0

    cc = jnp.zeros((2 * f_pad, l_pad), jnp.float32)
    cc = cc.at[:F, :L].set(cr).at[f_pad:f_pad + F, :L].set(ci)
    aar = jnp.zeros((l_pad, f_pad), jnp.float32).at[:L, :F].set(art)
    aai = jnp.zeros((l_pad, f_pad), jnp.float32).at[:L, :F].set(ait)
    return (cc.astype(jnp.bfloat16), aar.astype(jnp.bfloat16),
            aai.astype(jnp.bfloat16))


# ----------------------------- pallas_call builder --------------------------
def _pallas_encoder_call(xp, cc, aar, aai, wrp, wip, gp, bp, *,
                         num_hidden_layers, f_pad, true_h, emit_all,
                         single_buffer_consts):
    B, Lp, Hp = xp.shape
    Fp = f_pad
    n_out = num_hidden_layers if emit_all else 1

    const_kw = ({"pipeline_mode": pl.Buffered(1)}
                if single_buffer_consts else {})

    def const_spec(*shape):
        nd = len(shape)
        return pl.BlockSpec(shape, lambda b, l: (0,) * nd, **const_kw)

    in_specs = [
        pl.BlockSpec((1, Lp, Hp), lambda b, l: (b, 0, 0)),     # activations
        const_spec(2 * Fp, Lp),                                # [Cr; Ci]
        const_spec(Lp, Fp),                                    # irfft (real)
        const_spec(Lp, Fp),                                    # irfft (imag)
        const_spec(Fp, Hp),                                    # W real
        const_spec(Fp, Hp),                                    # W imag
        const_spec(1, Hp),                                     # LN gamma
        const_spec(1, Hp),                                     # LN beta
    ]
    if emit_all:
        out_spec = pl.BlockSpec((1, 1, Lp, Hp), lambda b, l: (l, b, 0, 0))
    else:
        out_spec = pl.BlockSpec((1, 1, Lp, Hp), lambda b, l: (0, b, 0, 0))

    # Explicit scoped-VMEM budget from the actual resident set (+25% headroom,
    # clamped to [32 MiB, 64 MiB] so it is safe on all generations incl. v7x).
    nbuf_const = 1 if single_buffer_consts else 2
    const_bytes = (2 * Fp * Lp * 2 + 2 * Lp * Fp * 2           # bases (bf16)
                   + 2 * Fp * Hp * 2                           # filter (bf16)
                   + 2 * Hp * 4)                               # LN params
    vmem_est = (2 * Lp * Hp * 4              # x input block (double-buffered)
                + 2 * Lp * Hp * 2            # out block (double-buffered bf16)
                + Lp * Hp * 4                # x_scr accumulator
                + nbuf_const * const_bytes
                + 2 * (2 * Fp) * Hp * 4      # xx / (yr, yi) f32 temporaries
                + 6 * Lp * Hp * 4)           # y/z/d/zn/out value temporaries
    vmem_limit = int(min(max(int(vmem_est * 1.25), 32 << 20), 64 << 20))

    kernel = functools.partial(encoder_stack_kernel, f_pad=Fp, true_h=true_h,
                               eps=1e-12, emit_all=emit_all)

    return pl.pallas_call(
        kernel,
        out_shape=jax.ShapeDtypeStruct((n_out, B, Lp, Hp), jnp.bfloat16),
        grid_spec=pltpu.PrefetchScalarGridSpec(
            num_scalar_prefetch=0,
            grid=(B, num_hidden_layers),
            in_specs=in_specs,
            out_specs=out_spec,
            scratch_shapes=[pltpu.VMEM((Lp, Hp), jnp.float32)],
        ),
        compiler_params=pltpu.CompilerParams(
            dimension_semantics=("parallel", "arbitrary"),
            vmem_limit_bytes=vmem_limit),
    )(xp, cc, aar, aai, wrp, wip, gp, bp)


# ------------------------------- Encoder ------------------------------------
def init_encoder_params(key, seq_len, emb_size):
    """FilterLayer params; copy.deepcopy in the reference means all layers
    share the same initial parameters, so create them once."""
    F = seq_len // 2 + 1
    cw = jax.random.normal(key, (1, F, emb_size, 2), dtype=jnp.float32) * 0.02
    wr = cw[0, :, :, 0]
    wi = cw[0, :, :, 1]
    gamma = jnp.ones((1, emb_size), dtype=jnp.float32)
    beta = jnp.zeros((1, emb_size), dtype=jnp.float32)
    return wr, wi, gamma, beta


def encoder_forward(hidden_states, params, num_hidden_layers,
                    output_all_encoded_layers=True):
    wr, wi, gamma, beta = params
    B, L, H = hidden_states.shape
    F = L // 2 + 1
    Lp = _round_up(L, 16)        # bf16 sublane tile
    Hp = _round_up(H, 128)       # lane-dense loads/stores + MXU N
    Fp = _round_up(F, 64)        # 2*Fp stays a multiple of 128

    cc, aar, aai = make_padded_dft_bases(L, Lp, Fp)

    # Zero-pad activations / per-frequency weights / LN params.
    xp = jnp.zeros((B, Lp, Hp), jnp.float32).at[:, :L, :H].set(hidden_states)
    wrp = jnp.zeros((Fp, Hp), jnp.bfloat16).at[:F, :H].set(
        wr.astype(jnp.bfloat16))
    wip = jnp.zeros((Fp, Hp), jnp.bfloat16).at[:F, :H].set(
        wi.astype(jnp.bfloat16))
    gp = jnp.zeros((1, Hp), jnp.float32).at[:, :H].set(gamma)
    bp = jnp.zeros((1, Hp), jnp.float32).at[:, :H].set(beta)

    call = functools.partial(
        _pallas_encoder_call, xp, cc, aar, aai, wrp, wip, gp, bp,
        num_hidden_layers=num_hidden_layers, f_pad=Fp, true_h=H,
        emit_all=output_all_encoded_layers)
    try:
        out = call(single_buffer_consts=True)
    except Exception:
        # pipeline_mode=pl.Buffered(1) not supported by this build; fall back
        # to the default double-buffered constant operands (correctness and
        # HBM traffic identical, only the VMEM footprint of constants grows).
        out = call(single_buffer_consts=False)

    # Strip padding; keep the module's f32 interface (kernel stores bf16).
    out = out[:, :, :L, :H].astype(jnp.float32)
    return [out[i] for i in range(out.shape[0])]


# ---------------------------- pure-JAX reference ----------------------------
def reference_forward(hidden_states, params, num_hidden_layers):
    wr, wi, gamma, beta = params
    w = wr + 1j * wi
    outs = []
    x = hidden_states
    for _ in range(num_hidden_layers):
        L = x.shape[1]
        X = jnp.fft.rfft(x, axis=1, norm="ortho")
        Y = X * w[None, :, :]
        # c2r transforms ignore imag parts of DC / Nyquist bins
        Y = Y.at[:, 0, :].set(Y[:, 0, :].real.astype(Y.dtype))
        if L % 2 == 0:
            Y = Y.at[:, -1, :].set(Y[:, -1, :].real.astype(Y.dtype))
        y = jnp.fft.irfft(Y, n=L, axis=1, norm="ortho")
        z = y + x
        u = jnp.mean(z, axis=-1, keepdims=True)
        s = jnp.mean((z - u) ** 2, axis=-1, keepdims=True)
        x = gamma[0] * ((z - u) / jnp.sqrt(s + 1e-12)) + beta[0]
        outs.append(x)
    return outs


# --------------------------------- main --------------------------------------
if __name__ == "__main__":
    batch, seq_len, emb_size = 2, 8, 32
    num_hidden_layers = 2

    key = jax.random.PRNGKey(0)
    k_x, k_w = jax.random.split(key)
    hidden_states = jax.random.normal(k_x, (batch, seq_len, emb_size),
                                      dtype=jnp.float32)
    params = init_encoder_params(k_w, seq_len, emb_size)

    outs = encoder_forward(hidden_states, params, num_hidden_layers,
                           output_all_encoded_layers=True)
    outs = [jax.block_until_ready(o) for o in outs]

    refs = reference_forward(hidden_states, params, num_hidden_layers)
    assert len(outs) == num_hidden_layers
    for o, r in zip(outs, refs):
        assert o.shape == r.shape
        # Accuracy bounded by bf16 DFT bases + bf16 output store.
        assert bool(jnp.allclose(o, r, rtol=2e-2, atol=1e-2)), \
            "mismatch vs reference"

    # Last-layer-only path: no intermediate-layer HBM writeback.
    last = encoder_forward(hidden_states, params, num_hidden_layers,
                           output_all_encoded_layers=False)
    last = [jax.block_until_ready(o) for o in last]
    assert len(last) == 1
    assert bool(jnp.allclose(last[0], refs[-1], rtol=2e-2, atol=1e-2))
    assert bool(jnp.allclose(last[0], outs[-1], rtol=1e-3, atol=1e-3))

    print("KERNEL_OK")
</pallas_src>

<mosaic_0001>
module attributes {stable_mosaic.version = 11 : i64} {
  func.func @encoder_stack_kernel(%arg0: i32, %arg1: i32, %arg2: memref<1x16x128xf32, #tpu.memory_space<vmem>>, %arg3: memref<128x16xbf16, #tpu.memory_space<vmem>>, %arg4: memref<16x64xbf16, #tpu.memory_space<vmem>>, %arg5: memref<16x64xbf16, #tpu.memory_space<vmem>>, %arg6: memref<64x128xbf16, #tpu.memory_space<vmem>>, %arg7: memref<64x128xbf16, #tpu.memory_space<vmem>>, %arg8: memref<1x128xf32, #tpu.memory_space<vmem>>, %arg9: memref<1x128xf32, #tpu.memory_space<vmem>>, %arg10: memref<1x1x16x128xbf16, #tpu.memory_space<vmem>>, %arg11: memref<16x128xf32, #tpu.memory_space<vmem>>) attributes {dimension_semantics = [#tpu.dimension_semantics<parallel>, #tpu.dimension_semantics<arbitrary>], iteration_bounds = array<i64: 2, 2>, scalar_prefetch = 0 : i64, scratch_operands = 1 : i64, tpu.core_type = #tpu.core_type<tc>, window_params = [{transform_indices = @transform_0, window_bounds = array<i64: 1, 16, 128>}, {pipeline_mode = #tpu.pipeline_mode<synchronous>, transform_indices = @transform_1, window_bounds = array<i64: 128, 16>}, {pipeline_mode = #tpu.pipeline_mode<synchronous>, transform_indices = @transform_2, window_bounds = array<i64: 16, 64>}, {pipeline_mode = #tpu.pipeline_mode<synchronous>, transform_indices = @transform_3, window_bounds = array<i64: 16, 64>}, {pipeline_mode = #tpu.pipeline_mode<synchronous>, transform_indices = @transform_4, window_bounds = array<i64: 64, 128>}, {pipeline_mode = #tpu.pipeline_mode<synchronous>, transform_indices = @transform_5, window_bounds = array<i64: 64, 128>}, {pipeline_mode = #tpu.pipeline_mode<synchronous>, transform_indices = @transform_6, window_bounds = array<i64: 1, 128>}, {pipeline_mode = #tpu.pipeline_mode<synchronous>, transform_indices = @transform_7, window_bounds = array<i64: 1, 128>}, {transform_indices = @transform_8, window_bounds = array<i64: 1, 1, 16, 128>}]} {
    %c0_i32 = arith.constant 0 : i32
    %0 = arith.cmpi eq, %arg1, %c0_i32 : i32
    %1 = arith.extui %0 : i1 to i32
    %c0_i32_0 = arith.constant 0 : i32
    %2 = arith.cmpi ne, %1, %c0_i32_0 : i32
    scf.if %2 {
      %c0_28 = arith.constant 0 : index
      %c0_29 = arith.constant 0 : index
      %c0_30 = arith.constant 0 : index
      %63 = vector.load %arg2[%c0_28, %c0_29, %c0_30] : memref<1x16x128xf32, #tpu.memory_space<vmem>>, vector<1x16x128xf32>
      %64 = vector.shape_cast %63 : vector<1x16x128xf32> to vector<16x128xf32>
      %c0_31 = arith.constant 0 : index
      %c0_32 = arith.constant 0 : index
      %65 = vector.load %arg11[%c0_31, %c0_32] : memref<16x128xf32, #tpu.memory_space<vmem>>, vector<16x128xf32>
      tpu.vector_store %arg11[%c0_31, %c0_32], %64 {strides = array<i32>} : memref<16x128xf32, #tpu.memory_space<vmem>>, vector<16x128xf32>,
    } else {
    }
    %c0 = arith.constant 0 : index
    %c0_1 = arith.constant 0 : index
    %3 = vector.load %arg11[%c0, %c0_1] : memref<16x128xf32, #tpu.memory_space<vmem>>, vector<16x128xf32>
    %c0_2 = arith.constant 0 : index
    %c0_3 = arith.constant 0 : index
    %4 = vector.load %arg3[%c0_2, %c0_3] : memref<128x16xbf16, #tpu.memory_space<vmem>>, vector<128x16xbf16>
    %5 = arith.truncf %3 : vector<16x128xf32> to vector<16x128xbf16>
    %cst = arith.constant dense<0.000000e+00> : vector<128x128xf32>
    %6 = tpu.matmul %4, %5, %cst {dimension_numbers = #tpu.dot_dimension_numbers<[1], [0], [0], [1], [0, 0, 1, 1], [], []>} : vector<128x16xbf16>, vector<16x128xbf16>, vector<128x128xf32> -> vector<128x128xf32>
    %7 = vector.extract_strided_slice %6 {offsets = [0, 0], sizes = [64, 128], strides = [1, 1]} : vector<128x128xf32> to vector<64x128xf32>
    %8 = vector.extract_strided_slice %6 {offsets = [64, 0], sizes = [64, 128], strides = [1, 1]} : vector<128x128xf32> to vector<64x128xf32>
    %c0_4 = arith.constant 0 : index
    %c0_5 = arith.constant 0 : index
    %9 = vector.load %arg6[%c0_4, %c0_5] : memref<64x128xbf16, #tpu.memory_space<vmem>>, vector<64x128xbf16>
    %10 = arith.extf %9 : vector<64x128xbf16> to vector<64x128xf32>
    %c0_6 = arith.constant 0 : index
    %c0_7 = arith.constant 0 : index
    %11 = vector.load %arg7[%c0_6, %c0_7] : memref<64x128xbf16, #tpu.memory_space<vmem>>, vector<64x128xbf16>
    %12 = arith.extf %11 : vector<64x128xbf16> to vector<64x128xf32>
    %13 = arith.mulf %7, %10 : vector<64x128xf32>
    %14 = arith.mulf %8, %12 : vector<64x128xf32>
    %15 = arith.subf %13, %14 : vector<64x128xf32>
    %16 = arith.mulf %7, %12 : vector<64x128xf32>
    %17 = arith.mulf %8, %10 : vector<64x128xf32>
    %18 = arith.addf %16, %17 : vector<64x128xf32>
    %c0_8 = arith.constant 0 : index
    %c0_9 = arith.constant 0 : index
    %19 = vector.load %arg4[%c0_8, %c0_9] : memref<16x64xbf16, #tpu.memory_space<vmem>>, vector<16x64xbf16>
    %20 = arith.truncf %15 : vector<64x128xf32> to vector<64x128xbf16>
    %cst_10 = arith.constant dense<0.000000e+00> : vector<16x128xf32>
    %21 = tpu.matmul %19, %20, %cst_10 {dimension_numbers = #tpu.dot_dimension_numbers<[1], [0], [0], [1], [0, 0, 1, 1], [], []>} : vector<16x64xbf16>, vector<64x128xbf16>, vector<16x128xf32> -> vector<16x128xf32>
    %c0_11 = arith.constant 0 : index
    %c0_12 = arith.constant 0 : index
    %22 = vector.load %arg5[%c0_11, %c0_12] : memref<16x64xbf16, #tpu.memory_space<vmem>>, vector<16x64xbf16>
    %23 = arith.truncf %18 : vector<64x128xf32> to vector<64x128xbf16>
    %cst_13 = arith.constant dense<0.000000e+00> : vector<16x128xf32>
    %24 = tpu.matmul %22, %23, %cst_13 {dimension_numbers = #tpu.dot_dimension_numbers<[1], [0], [0], [1], [0, 0, 1, 1], [], []>} : vector<16x64xbf16>, vector<64x128xbf16>, vector<16x128xf32> -> vector<16x128xf32>
    %25 = arith.addf %21, %24 : vector<16x128xf32>
    %26 = arith.addf %25, %3 : vector<16x128xf32>
    %cst_14 = arith.constant dense<0.000000e+00> : vector<16xf32>
    %27 = vector.multi_reduction <add>, %26, %cst_14 [1] : vector<16x128xf32> to vector<16xf32>
    %28 = vector.shape_cast %27 : vector<16xf32> to vector<16x1xf32>
    %cst_15 = arith.constant 3.125000e-02 : f32
    %29 = vector.broadcast %cst_15 : f32 to vector<16x1xf32>
    %30 = arith.mulf %28, %29 : vector<16x1xf32>
    %31 = tpu.iota {dimensions = array<i32: 1>} : vector<1x128xi32>
    %32 = vector.broadcast %30 : vector<16x1xf32> to vector<16x128xf32>
    %33 = arith.subf %26, %32 : vector<16x128xf32>
    %c32_i32 = arith.constant 32 : i32
    %34 = vector.broadcast %c32_i32 : i32 to vector<1x128xi32>
    %35 = arith.cmpi slt, %31, %34 : vector<1x128xi32>
    %36 = arith.extui %35 : vector<1x128xi1> to vector<1x128xi32>
    %37 = arith.sitofp %36 : vector<1x128xi32> to vector<1x128xf32>
    %38 = vector.broadcast %37 : vector<1x128xf32> to vector<16x128xf32>
    %39 = arith.mulf %33, %38 : vector<16x128xf32>
    %40 = arith.mulf %39, %39 : vector<16x128xf32>
    %cst_16 = arith.constant dense<0.000000e+00> : vector<16xf32>
    %41 = vector.multi_reduction <add>, %40, %cst_16 [1] : vector<16x128xf32> to vector<16xf32>
    %42 = vector.shape_cast %41 : vector<16xf32> to vector<16x1xf32>
    %cst_17 = arith.constant 3.125000e-02 : f32
    %43 = vector.broadcast %cst_17 : f32 to vector<16x1xf32>
    %44 = arith.mulf %42, %43 : vector<16x1xf32>
    %cst_18 = arith.constant 9.99999996E-13 : f32
    %45 = vector.broadcast %cst_18 : f32 to vector<16x1xf32>
    %46 = arith.addf %44, %45 : vector<16x1xf32>
    %47 = math.rsqrt %46 : vector<16x1xf32>
    %48 = vector.broadcast %47 : vector<16x1xf32> to vector<16x128xf32>
    %49 = arith.mulf %39, %48 : vector<16x128xf32>
    %c0_19 = arith.constant 0 : index
    %c0_20 = arith.constant 0 : index
    %50 = vector.load %arg8[%c0_19, %c0_20] : memref<1x128xf32, #tpu.memory_space<vmem>>, vector<1x128xf32>
    %51 = vector.broadcast %50 : vector<1x128xf32> to vector<16x128xf32>
    %52 = arith.mulf %51, %49 : vector<16x128xf32>
    %c0_21 = arith.constant 0 : index
    %c0_22 = arith.constant 0 : index
    %53 = vector.load %arg9[%c0_21, %c0_22] : memref<1x128xf32, #tpu.memory_space<vmem>>, vector<1x128xf32>
    %54 = vector.broadcast %53 : vector<1x128xf32> to vector<16x128xf32>
    %55 = arith.addf %52, %54 : vector<16x128xf32>
    %c1_i32 = arith.constant 1 : i32
    %56 = arith.cmpi slt, %arg1, %c1_i32 : i32
    %57 = arith.extui %56 : i1 to i32
    %c0_i32_23 = arith.constant 0 : i32
    %58 = arith.cmpi ne, %57, %c0_i32_23 : i32
    scf.if %58 {
      %c0_28 = arith.constant 0 : index
      %c0_29 = arith.constant 0 : index
      %63 = vector.load %arg11[%c0_28, %c0_29] : memref<16x128xf32, #tpu.memory_space<vmem>>, vector<16x128xf32>
      tpu.vector_store %arg11[%c0_28, %c0_29], %55 {strides = array<i32>} : memref<16x128xf32, #tpu.memory_space<vmem>>, vector<16x128xf32>,
    } else {
    }
    %59 = arith.truncf %55 : vector<16x128xf32> to vector<16x128xbf16>
    %c0_24 = arith.constant 0 : index
    %c0_25 = arith.constant 0 : index
    %c0_26 = arith.constant 0 : index
    %c0_27 = arith.constant 0 : index
    %60 = vector.load %arg10[%c0_24, %c0_25, %c0_26, %c0_27] : memref<1x1x16x128xbf16, #tpu.memory_space<vmem>>, vector<1x1x16x128xbf16>
    %61 = vector.shape_cast %60 : vector<1x1x16x128xbf16> to vector<16x128xbf16>
    %62 = vector.shape_cast %59 : vector<16x128xbf16> to vector<1x1x16x128xbf16>
    tpu.vector_store %arg10[%c0_24, %c0_25, %c0_26, %c0_27], %62 {strides = array<i32>} : memref<1x1x16x128xbf16, #tpu.memory_space<vmem>>, vector<1x1x16x128xbf16>,
    return
  }
  func.func @transform_0(%arg0: i32, %arg1: i32) -> (i32, i32, i32) {
    %c0_i32 = arith.constant 0 : i32
    %c0_i32_0 = arith.constant 0 : i32
    %c0_i32_1 = arith.constant 0 : i32
    return %arg0, %c0_i32, %c0_i32_0 : i32, i32, i32
  }
  func.func @transform_1(%arg0: i32, %arg1: i32) -> (i32, i32) {
    %c0_i32 = arith.constant 0 : i32
    %c0_i32_0 = arith.constant 0 : i32
    %c0_i32_1 = arith.constant 0 : i32
    return %c0_i32, %c0_i32_0 : i32, i32
  }
  func.func @transform_2(%arg0: i32, %arg1: i32) -> (i32, i32) {
    %c0_i32 = arith.constant 0 : i32
    %c0_i32_0 = arith.constant 0 : i32
    %c0_i32_1 = arith.constant 0 : i32
    return %c0_i32, %c0_i32_0 : i32, i32
  }
  func.func @transform_3(%arg0: i32, %arg1: i32) -> (i32, i32) {
    %c0_i32 = arith.constant 0 : i32
    %c0_i32_0 = arith.constant 0 : i32
    %c0_i32_1 = arith.constant 0 : i32
    return %c0_i32, %c0_i32_0 : i32, i32
  }
  func.func @transform_4(%arg0: i32, %arg1: i32) -> (i32, i32) {
    %c0_i32 = arith.constant 0 : i32
    %c0_i32_0 = arith.constant 0 : i32
    %c0_i32_1 = arith.constant 0 : i32
    return %c0_i32, %c0_i32_0 : i32, i32
  }
  func.func @transform_5(%arg0: i32, %arg1: i32) -> (i32, i32) {
    %c0_i32 = arith.constant 0 : i32
    %c0_i32_0 = arith.constant 0 : i32
    %c0_i32_1 = arith.constant 0 : i32
    return %c0_i32, %c0_i32_0 : i32, i32
  }
  func.func @transform_6(%arg0: i32, %arg1: i32) -> (i32, i32) {
    %c0_i32 = arith.constant 0 : i32
    %c0_i32_0 = arith.constant 0 : i32
    %c0_i32_1 = arith.constant 0 : i32
    return %c0_i32, %c0_i32_0 : i32, i32
  }
  func.func @transform_7(%arg0: i32, %arg1: i32) -> (i32, i32) {
    %c0_i32 = arith.constant 0 : i32
    %c0_i32_0 = arith.constant 0 : i32
    %c0_i32_1 = arith.constant 0 : i32
    return %c0_i32, %c0_i32_0 : i32, i32
  }
  func.func @transform_8(%arg0: i32, %arg1: i32) -> (i32, i32, i32, i32) {
    %c0_i32 = arith.constant 0 : i32
    %c0_i32_0 = arith.constant 0 : i32
    %c0_i32_1 = arith.constant 0 : i32
    return %arg1, %arg0, %c0_i32, %c0_i32_0 : i32, i32, i32, i32
  }
}

module attributes {stable_mosaic.version = 11 : i64} {
  func.func @encoder_stack_kernel(%arg0: i32, %arg1: i32, %arg2: memref<1x16x128xf32, #tpu.memory_space<vmem>>, %arg3: memref<128x16xbf16, #tpu.memory_space<vmem>>, %arg4: memref<16x64xbf16, #tpu.memory_space<vmem>>, %arg5: memref<16x64xbf16, #tpu.memory_space<vmem>>, %arg6: memref<64x128xbf16, #tpu.memory_space<vmem>>, %arg7: memref<64x128xbf16, #tpu.memory_space<vmem>>, %arg8: memref<1x128xf32, #tpu.memory_space<vmem>>, %arg9: memref<1x128xf32, #tpu.memory_space<vmem>>, %arg10: memref<1x1x16x128xbf16, #tpu.memory_space<vmem>>, %arg11: memref<16x128xf32, #tpu.memory_space<vmem>>) attributes {dimension_semantics = [#tpu.dimension_semantics<parallel>, #tpu.dimension_semantics<arbitrary>], iteration_bounds = array<i64: 2, 2>, scalar_prefetch = 0 : i64, scratch_operands = 1 : i64, tpu.core_type = #tpu.core_type<tc>, window_params = [{transform_indices = @transform_0, window_bounds = array<i64: 1, 16, 128>}, {pipeline_mode = #tpu.pipeline_mode<synchronous>, transform_indices = @transform_1, window_bounds = array<i64: 128, 16>}, {pipeline_mode = #tpu.pipeline_mode<synchronous>, transform_indices = @transform_2, window_bounds = array<i64: 16, 64>}, {pipeline_mode = #tpu.pipeline_mode<synchronous>, transform_indices = @transform_3, window_bounds = array<i64: 16, 64>}, {pipeline_mode = #tpu.pipeline_mode<synchronous>, transform_indices = @transform_4, window_bounds = array<i64: 64, 128>}, {pipeline_mode = #tpu.pipeline_mode<synchronous>, transform_indices = @transform_5, window_bounds = array<i64: 64, 128>}, {pipeline_mode = #tpu.pipeline_mode<synchronous>, transform_indices = @transform_6, window_bounds = array<i64: 1, 128>}, {pipeline_mode = #tpu.pipeline_mode<synchronous>, transform_indices = @transform_7, window_bounds = array<i64: 1, 128>}, {transform_indices = @transform_8, window_bounds = array<i64: 1, 1, 16, 128>}]} {
    %c0_i32 = arith.constant 0 : i32
    %0 = arith.cmpi eq, %arg1, %c0_i32 : i32
    %1 = arith.extui %0 : i1 to i32
    %c0_i32_0 = arith.constant 0 : i32
    %2 = arith.cmpi ne, %1, %c0_i32_0 : i32
    scf.if %2 {
      %c0_28 = arith.constant 0 : index
      %c0_29 = arith.constant 0 : index
      %c0_30 = arith.constant 0 : index
      %63 = vector.load %arg2[%c0_28, %c0_29, %c0_30] : memref<1x16x128xf32, #tpu.memory_space<vmem>>, vector<1x16x128xf32>
      %64 = vector.shape_cast %63 : vector<1x16x128xf32> to vector<16x128xf32>
      %c0_31 = arith.constant 0 : index
      %c0_32 = arith.constant 0 : index
      %65 = vector.load %arg11[%c0_31, %c0_32] : memref<16x128xf32, #tpu.memory_space<vmem>>, vector<16x128xf32>
      tpu.vector_store %arg11[%c0_31, %c0_32], %64 {strides = array<i32>} : memref<16x128xf32, #tpu.memory_space<vmem>>, vector<16x128xf32>,
    } else {
    }
    %c0 = arith.constant 0 : index
    %c0_1 = arith.constant 0 : index
    %3 = vector.load %arg11[%c0, %c0_1] : memref<16x128xf32, #tpu.memory_space<vmem>>, vector<16x128xf32>
    %c0_2 = arith.constant 0 : index
    %c0_3 = arith.constant 0 : index
    %4 = vector.load %arg3[%c0_2, %c0_3] : memref<128x16xbf16, #tpu.memory_space<vmem>>, vector<128x16xbf16>
    %5 = arith.truncf %3 : vector<16x128xf32> to vector<16x128xbf16>
    %cst = arith.constant dense<0.000000e+00> : vector<128x128xf32>
    %6 = tpu.matmul %4, %5, %cst {dimension_numbers = #tpu.dot_dimension_numbers<[1], [0], [0], [1], [0, 0, 1, 1], [], []>} : vector<128x16xbf16>, vector<16x128xbf16>, vector<128x128xf32> -> vector<128x128xf32>
    %7 = vector.extract_strided_slice %6 {offsets = [0, 0], sizes = [64, 128], strides = [1, 1]} : vector<128x128xf32> to vector<64x128xf32>
    %8 = vector.extract_strided_slice %6 {offsets = [64, 0], sizes = [64, 128], strides = [1, 1]} : vector<128x128xf32> to vector<64x128xf32>
    %c0_4 = arith.constant 0 : index
    %c0_5 = arith.constant 0 : index
    %9 = vector.load %arg6[%c0_4, %c0_5] : memref<64x128xbf16, #tpu.memory_space<vmem>>, vector<64x128xbf16>
    %10 = arith.extf %9 : vector<64x128xbf16> to vector<64x128xf32>
    %c0_6 = arith.constant 0 : index
    %c0_7 = arith.constant 0 : index
    %11 = vector.load %arg7[%c0_6, %c0_7] : memref<64x128xbf16, #tpu.memory_space<vmem>>, vector<64x128xbf16>
    %12 = arith.extf %11 : vector<64x128xbf16> to vector<64x128xf32>
    %13 = arith.mulf %7, %10 : vector<64x128xf32>
    %14 = arith.mulf %8, %12 : vector<64x128xf32>
    %15 = arith.subf %13, %14 : vector<64x128xf32>
    %16 = arith.mulf %7, %12 : vector<64x128xf32>
    %17 = arith.mulf %8, %10 : vector<64x128xf32>
    %18 = arith.addf %16, %17 : vector<64x128xf32>
    %c0_8 = arith.constant 0 : index
    %c0_9 = arith.constant 0 : index
    %19 = vector.load %arg4[%c0_8, %c0_9] : memref<16x64xbf16, #tpu.memory_space<vmem>>, vector<16x64xbf16>
    %20 = arith.truncf %15 : vector<64x128xf32> to vector<64x128xbf16>
    %cst_10 = arith.constant dense<0.000000e+00> : vector<16x128xf32>
    %21 = tpu.matmul %19, %20, %cst_10 {dimension_numbers = #tpu.dot_dimension_numbers<[1], [0], [0], [1], [0, 0, 1, 1], [], []>} : vector<16x64xbf16>, vector<64x128xbf16>, vector<16x128xf32> -> vector<16x128xf32>
    %c0_11 = arith.constant 0 : index
    %c0_12 = arith.constant 0 : index
    %22 = vector.load %arg5[%c0_11, %c0_12] : memref<16x64xbf16, #tpu.memory_space<vmem>>, vector<16x64xbf16>
    %23 = arith.truncf %18 : vector<64x128xf32> to vector<64x128xbf16>
    %cst_13 = arith.constant dense<0.000000e+00> : vector<16x128xf32>
    %24 = tpu.matmul %22, %23, %cst_13 {dimension_numbers = #tpu.dot_dimension_numbers<[1], [0], [0], [1], [0, 0, 1, 1], [], []>} : vector<16x64xbf16>, vector<64x128xbf16>, vector<16x128xf32> -> vector<16x128xf32>
    %25 = arith.addf %21, %24 : vector<16x128xf32>
    %26 = arith.addf %25, %3 : vector<16x128xf32>
    %cst_14 = arith.constant dense<0.000000e+00> : vector<16xf32>
    %27 = vector.multi_reduction <add>, %26, %cst_14 [1] : vector<16x128xf32> to vector<16xf32>
    %28 = vector.shape_cast %27 : vector<16xf32> to vector<16x1xf32>
    %cst_15 = arith.constant 3.125000e-02 : f32
    %29 = vector.broadcast %cst_15 : f32 to vector<16x1xf32>
    %30 = arith.mulf %28, %29 : vector<16x1xf32>
    %31 = tpu.iota {dimensions = array<i32: 1>} : vector<1x128xi32>
    %32 = vector.broadcast %30 : vector<16x1xf32> to vector<16x128xf32>
    %33 = arith.subf %26, %32 : vector<16x128xf32>
    %c32_i32 = arith.constant 32 : i32
    %34 = vector.broadcast %c32_i32 : i32 to vector<1x128xi32>
    %35 = arith.cmpi slt, %31, %34 : vector<1x128xi32>
    %36 = arith.extui %35 : vector<1x128xi1> to vector<1x128xi32>
    %37 = arith.sitofp %36 : vector<1x128xi32> to vector<1x128xf32>
    %38 = vector.broadcast %37 : vector<1x128xf32> to vector<16x128xf32>
    %39 = arith.mulf %33, %38 : vector<16x128xf32>
    %40 = arith.mulf %39, %39 : vector<16x128xf32>
    %cst_16 = arith.constant dense<0.000000e+00> : vector<16xf32>
    %41 = vector.multi_reduction <add>, %40, %cst_16 [1] : vector<16x128xf32> to vector<16xf32>
    %42 = vector.shape_cast %41 : vector<16xf32> to vector<16x1xf32>
    %cst_17 = arith.constant 3.125000e-02 : f32
    %43 = vector.broadcast %cst_17 : f32 to vector<16x1xf32>
    %44 = arith.mulf %42, %43 : vector<16x1xf32>
    %cst_18 = arith.constant 9.99999996E-13 : f32
    %45 = vector.broadcast %cst_18 : f32 to vector<16x1xf32>
    %46 = arith.addf %44, %45 : vector<16x1xf32>
    %47 = math.rsqrt %46 : vector<16x1xf32>
    %48 = vector.broadcast %47 : vector<16x1xf32> to vector<16x128xf32>
    %49 = arith.mulf %39, %48 : vector<16x128xf32>
    %c0_19 = arith.constant 0 : index
    %c0_20 = arith.constant 0 : index
    %50 = vector.load %arg8[%c0_19, %c0_20] : memref<1x128xf32, #tpu.memory_space<vmem>>, vector<1x128xf32>
    %51 = vector.broadcast %50 : vector<1x128xf32> to vector<16x128xf32>
    %52 = arith.mulf %51, %49 : vector<16x128xf32>
    %c0_21 = arith.constant 0 : index
    %c0_22 = arith.constant 0 : index
    %53 = vector.load %arg9[%c0_21, %c0_22] : memref<1x128xf32, #tpu.memory_space<vmem>>, vector<1x128xf32>
    %54 = vector.broadcast %53 : vector<1x128xf32> to vector<16x128xf32>
    %55 = arith.addf %52, %54 : vector<16x128xf32>
    %c1_i32 = arith.constant 1 : i32
    %56 = arith.cmpi slt, %arg1, %c1_i32 : i32
    %57 = arith.extui %56 : i1 to i32
    %c0_i32_23 = arith.constant 0 : i32
    %58 = arith.cmpi ne, %57, %c0_i32_23 : i32
    scf.if %58 {
      %c0_28 = arith.constant 0 : index
      %c0_29 = arith.constant 0 : index
      %63 = vector.load %arg11[%c0_28, %c0_29] : memref<16x128xf32, #tpu.memory_space<vmem>>, vector<16x128xf32>
      tpu.vector_store %arg11[%c0_28, %c0_29], %55 {strides = array<i32>} : memref<16x128xf32, #tpu.memory_space<vmem>>, vector<16x128xf32>,
    } else {
    }
    %59 = arith.truncf %55 : vector<16x128xf32> to vector<16x128xbf16>
    %c0_24 = arith.constant 0 : index
    %c0_25 = arith.constant 0 : index
    %c0_26 = arith.constant 0 : index
    %c0_27 = arith.constant 0 : index
    %60 = vector.load %arg10[%c0_24, %c0_25, %c0_26, %c0_27] : memref<1x1x16x128xbf16, #tpu.memory_space<vmem>>, vector<1x1x16x128xbf16>
    %61 = vector.shape_cast %60 : vector<1x1x16x128xbf16> to vector<16x128xbf16>
    %62 = vector.shape_cast %59 : vector<16x128xbf16> to vector<1x1x16x128xbf16>
    tpu.vector_store %arg10[%c0_24, %c0_25, %c0_26, %c0_27], %62 {strides = array<i32>} : memref<1x1x16x128xbf16, #tpu.memory_space<vmem>>, vector<1x1x16x128xbf16>,
    return
  }
  func.func @transform_0(%arg0: i32, %arg1: i32) -> (i32, i32, i32) {
    %c0_i32 = arith.constant 0 : i32
    %c0_i32_0 = arith.constant 0 : i32
    %c0_i32_1 = arith.constant 0 : i32
    return %arg0, %c0_i32, %c0_i32_0 : i32, i32, i32
  }
  func.func @transform_1(%arg0: i32, %arg1: i32) -> (i32, i32) {
    %c0_i32 = arith.constant 0 : i32
    %c0_i32_0 = arith.constant 0 : i32
    %c0_i32_1 = arith.constant 0 : i32
    return %c0_i32, %c0_i32_0 : i32, i32
  }
  func.func @transform_2(%arg0: i32, %arg1: i32) -> (i32, i32) {
    %c0_i32 = arith.constant 0 : i32
    %c0_i32_0 = arith.constant 0 : i32
    %c0_i32_1 = arith.constant 0 : i32
    return %c0_i32, %c0_i32_0 : i32, i32
  }
  func.func @transform_3(%arg0: i32, %arg1: i32) -> (i32, i32) {
    %c0_i32 = arith.constant 0 : i32
    %c0_i32_0 = arith.constant 0 : i32
    %c0_i32_1 = arith.constant 0 : i32
    return %c0_i32, %c0_i32_0 : i32, i32
  }
  func.func @transform_4(%arg0: i32, %arg1: i32) -> (i32, i32) {
    %c0_i32 = arith.constant 0 : i32
    %c0_i32_0 = arith.constant 0 : i32
    %c0_i32_1 = arith.constant 0 : i32
    return %c0_i32, %c0_i32_0 : i32, i32
  }
  func.func @transform_5(%arg0: i32, %arg1: i32) -> (i32, i32) {
    %c0_i32 = arith.constant 0 : i32
    %c0_i32_0 = arith.constant 0 : i32
    %c0_i32_1 = arith.constant 0 : i32
    return %c0_i32, %c0_i32_0 : i32, i32
  }
  func.func @transform_6(%arg0: i32, %arg1: i32) -> (i32, i32) {
    %c0_i32 = arith.constant 0 : i32
    %c0_i32_0 = arith.constant 0 : i32
    %c0_i32_1 = arith.constant 0 : i32
    return %c0_i32, %c0_i32_0 : i32, i32
  }
  func.func @transform_7(%arg0: i32, %arg1: i32) -> (i32, i32) {
    %c0_i32 = arith.constant 0 : i32
    %c0_i32_0 = arith.constant 0 : i32
    %c0_i32_1 = arith.constant 0 : i32
    return %c0_i32, %c0_i32_0 : i32, i32
  }
  func.func @transform_8(%arg0: i32, %arg1: i32) -> (i32, i32, i32, i32) {
    %c0_i32 = arith.constant 0 : i32
    %c0_i32_0 = arith.constant 0 : i32
    %c0_i32_1 = arith.constant 0 : i32
    return %arg1, %arg0, %c0_i32, %c0_i32_0 : i32, i32, i32, i32
  }
}

</mosaic_0001>

<bundles_post_ra>
// kernel: tpu_custom_call.1
= control target key start
LH: loop header
LB: loop body
LE: loop exit
PB: predicated region body
PF: predicated region fallthrough
CT: control target
= control target key end

     0   :  { %13 = vsyncpa [#allocation4], 0  ;;  %s1602_s0 = inlined_call_operand.vmem [shape: f32[2,16,128], index: 0, kind: input, shape index: {}]   ;;  %s1603_s1 = inlined_call_operand.vmem [shape: bf16[128,16], index: 1, kind: input, shape index: {}]   ;;  %s1604_s2 = inlined_call_operand.vmem [shape: bf16[16,64], index: 2, kind: input, shape index: {}]   ;;  %s1605_s3 = inlined_call_operand.vmem [shape: bf16[16,64], index: 3, kind: input, shape index: {}]   ;;  %s1606_s4 = inlined_call_operand.vmem [shape: bf16[64,128], index: 4, kind: input, shape index: {}]   ;;  %s1607_s5 = inlined_call_operand.hbm [shape: bf16[64,128], index: 5, kind: input, shape index: {}]   ;;  %s1608_s6 = inlined_call_operand.vmem [shape: f32[1,128], index: 6, kind: input, shape index: {}]   ;;  %s1609_s7 = inlined_call_operand.vmem [shape: f32[1,128], index: 7, kind: input, shape index: {}]   ;;  %s1610_s8 = inlined_call_operand.hbm [shape: bf16[2,2,16,128], index: 8, kind: output, shape index: {}]  }
   0x1   :  { %14 = vsyncpa [#allocation5], 0 }
   0x2   :  { %16 = vsyncpa [#allocation5 + $0x1], 0  ;;  %s1316_s27 = smov 0   ;;  %s1318_s28 = smov 0  }
   0x3   :  { %s1320_s29 = smov 0   ;;  %s1322_s30 = smov 0  }
   0x4   :  { %s1324_s9 = smov 0   ;;  %s1326_s10 = smov 0  }
   0x5   :  { %s1328_s11 = smov 0   ;;  %s1330_s12 = smov 0  }
   0x6 LB: > { %1618 = sst [smem:[#allocation9_spill]] %s1257_s11  ;;  %s883_s13 = sadd.s32 4294967295, %s1261_s12   ;;  %s1261_s12 = sphi %s1330_s12, %s22_s12   ;;  %s1257_s11 = sphi %s1328_s11, %s1632_s11   ;;  %s1253_s10 = sphi %s1326_s10, %s1637_s10   ;;  %s1249_s9 = sphi %s1324_s9, %s1630_s9   ;;  %s1245_s30 = sphi %s1322_s30, %s1636_s30   ;;  %s1241_s29 = sphi %s1320_s29, %s1635_s29   ;;  %s1237_s28 = sphi %s1318_s28, %s1634_s28   ;;  %s1233_s27 = sphi %s1316_s27, %s1633_s27  }
   0x7   : > { %s884_s14 = sadd.s32 4294967294, %s1261_s12   ;;  %s31_s15 = sadd.s32 1, %s1253_s10 }
   0x8   : > { %s34_s16 = sadd.s32 1, %s1257_s11  ;;  %p32_p0 = scmp.ge.s32.totalorder %s31_s15, 2 }
   0x9   : > { %s216_s17 = sadd.s32 1, %s1241_s29  ;;  %p226_p1 = scmp.ne.s32.totalorder %s1241_s29, %s1237_s28 }
   0xa   : > { %p227_p2 = scmp.eq.s32.totalorder %s883_s13, 3  ;;  %s1639_s15 = smov (%p32_p0, %s31_s15), 0 }
   0xb   : > { %1619 = sst [smem:[#allocation10_spill]] %s1639_s15  ;;  %s1641_s16 = smov (!%p32_p0, %s34_s16), %s1257_s11 }
   0xc   : > { %s211_s18 = ssub.s32 %s1253_s10, %s1639_s15  ;;  %p1368_p3 = por %p227_p2, %p226_p1 }
   0xd   : > { %p36_p4 = scmp.ge.s32.totalorder %s1641_s16, 2  ;;  %p232_p5 = scmp.ne.s32.totalorder %s1237_s28, %s1233_s27 }
   0xe   : > { %s1620_s19 = scalar_select %p1368_p3, 1, 0 }
   0xf   : > { %p233_p6 = scmp.eq.s32.totalorder %s884_s14, 3  ;;  %p885_p7 = scmp.ge.s32.totalorder %s1261_s12, 1 }
  0x10   : > { %s1643_s16 = smov (%p36_p4, %s1641_s16), 0  ;;  %p240_p9 = scmp.lt.s32.totalorder %s1261_s12, 5 }
  0x11   : > { %1621 = sst [smem:[#allocation11_spill]] %s1643_s16  ;;  %p1377_p8 = por %p233_p6, %p232_p5 }
  0x12   : > { %s212_s21 = ssub.s32 %s1257_s11, %s1643_s16  ;;  %p1384_p10 = pnand %p885_p7, %p240_p9 }
  0x13   : > { %s1622_s20 = scalar_select %p1377_p8, 1, 0 }
  0x14   : > { %s213_s22 = sor.u32 %s212_s21, %s211_s18  ;;  %p1388_p12 = scmp.eq.s32.totalorder %s883_s13, 0 }
  0x15   : > { %s1623_s23 = scalar_select %p1384_p10, 1, 0 }
  0x16   : > { %p214_p11 = scmp.eq.s32.totalorder %s213_s22, 0  ;;  %p1039_p13 = pneg %p1384_p10 }
  0x17   : > { %s1624_s24 = scalar_select %p1388_p12, 1, 0 }
  0x18   : > { %s1395_s25 = scalar_select %p214_p11, %s1241_s29, %s216_s17  }
  0x19   : > { %s1263_s26 = smov [#allocation3]   ;;  %p1399_p0 = pnand %p1388_p12, %p1039_p13 }
  0x1a   : > { %s264_s14 = sshll.u32 %s1263_s26, 4  ;;  %s1135_s13 = scalar_lea.hbm %s1607_s5, 512  ;;  %s265_s14 = int_to_ptr.vmem [resolvable:$true] %s264_s14 }
  0x1b   : > { %p1136_p1 = scmp.ne.s32.totalorder %s1607_s5, %s1135_s13  ;;  %p1137_p2 = pneg %p1399_p0 }
  0x1c   : > { %p1142_p6 = scmp.lt.u32.totalorder %s1135_s13, %s1607_s5 }
  0x1d   : > { %p1138_p4 = pnand %p1137_p2, %p1136_p1 }
  0x1f   : > { %p1139_p5 = pneg %p1138_p4 }
  0x21   : > { %p1144_p7 = pnand %p1142_p6, %p1139_p5 }
  0x23   : > { %1147 = shalt.err (!%p1144_p7)
}
  0x24   : > { %s1148_s11 = scalar_lea.vmem %s265_s14, 512  ;;  %p1156_p8 = scmp.lt.s32.totalorder %s265_s14, %s265_s14 }
  0x25   : > { %p1149_p9 = scmp.ne.s32.totalorder %s265_s14, %s1148_s11  ;;  %p1157_p3 = scmp.lt.s32.totalorder %s1148_s11, %s1148_s11 }
  0x27   : > { %p1151_p11 = pnand %p1149_p9, %p1137_p2  ;;  %p1158_p12 = por %p1157_p3, %p1156_p8 }
  0x29   : > { %p1152_p13 = pneg %p1151_p11 }
  0x2b   : > { %p1159_p10 = pnand %p1158_p12, %p1152_p13 }
  0x2d   : > { %1162 = shalt.err (!%p1159_p10)
}
  0x2e   : > { %s1264_s15 = smov 64   ;;  %s1265_s16 = smov 4  }
  0x2f   : > { %1042 = dma.hbm_to_vmem [thread:$0]  (!%p1399_p0), %s1607_s5, 512, %s265_s14, [#allocation4], %s1264_s15, %s1264_s15, %s1265_s16  }
  0x30   : > { %p1626_p1 = scmp.ne.s32.totalorder %s1623_s23, 0 }
  0x31   : > { %p1627_p4 = scmp.ne.s32.totalorder (!%p1626_p1), %s1624_s24, 0 }
  0x32   : > { %294 = sbr.rel (%p1626_p1) target bundleno = 909 (0x38d), region = 52 }
  0x39   : > { %1224 = dma.done.wait (%p1627_p4), [#allocation4], 512  }
  0x3a   : > { %1226 = vsyncadd (%p1627_p4), [#allocation4], 4294966784  ;;  %s325_s11 = sand.u32 1, %s1237_s28   ;;  %p328_p3 = scmp.lt.s32.totalorder %s1249_s9, 1 }
  0x3b   : > { %s1429_s18 = sshll.u32 %s325_s11, 3  ;;  %p893_p8 = scmp.ne.s32.totalorder %s1245_s30, 0 }
  0x3c   : > { %s329_s14 = scalar_select %p328_p3, %s1249_s9, 1 }
  0x3d   : > { %s327_s15 = scalar_lea.vmem [#allocation6], %s1429_s18  ;;  %337 = sbr.rel (%p893_p8) target bundleno = 68 (0x44), region = 60 }
  0x3e   : > { %s926_s13 = sshll.u32 %s329_s14, 4 }
  0x3f   : > { %s332_s26 = scalar_lea.vmem %s1602_s0, %s926_s13 }
  0x40   : > { %v338_v0 = vld [vmem:[%s332_s26] sm:$0xff] (!%p893_p8)  ;;  %v339_v1 = vld [vmem:[%s332_s26 + $0x8] sm:$0xff] (!%p893_p8) }
  0x41   : > { %340 = vst [vmem:[#allocation2] sm:$0xff] (!%p893_p8), %v338_v0  ;;  %341 = vst [vmem:[#allocation2 + $0x8] sm:$0xff] (!%p893_p8), %v339_v1 }
  0x44 PF: > { %vm401_vm0 = vcmask 130048   ;;  %v1121_v5 = vld [vmem:[%s1603_s1] sm:$0xff]   ;;  %v1122_v6 = vld [vmem:[%s1603_s1 + $0x8] sm:$0xff]   ;;  %v1123_v7 = vld [vmem:[%s1603_s1 + $0x10] sm:$0xff]   ;;  %v1266_v13 = vmov 0.0   ;;  %vm1267_vm1 = vmmov 0  }
  0x45   : > { %993 = vmatprep.mubr.msk.bf16.mxu0 %vm401_vm0, %v1121_v5  ;;  %v1124_v8 = vld [vmem:[%s1603_s1 + $0x18] sm:$0xff]   ;;  %v1125_v9 = vld [vmem:[%s1603_s1 + $0x20] sm:$0xff]   ;;  %v1126_v10 = vld [vmem:[%s1603_s1 + $0x28] sm:$0xff]   ;;  %1009 = vmatprep.subr.bf16.mxu1 %v1266_v13  ;;  %vm620_vm2 = vcmask 523264   ;;  %p917_p10 = scmp.ge.s32.totalorder %s1245_s30, 1 }
  0x46   : > { %v1127_v11 = vld [vmem:[%s1603_s1 + $0x30] sm:$0xff]   ;;  %v1128_v12 = vld [vmem:[%s1603_s1 + $0x38] sm:$0xff]   ;;  %1017 = vmatprep.mubr.msk.bf16.mxu1 %vm1267_vm1, %v1266_v13  ;;  %v966_v18 = vld [vmem:[%s1606_s4 + $0x8] sm:$0xff]  }
  0x47   : > { %v969_v20 = vld [vmem:[#allocation3 + $0x8] sm:$0xff]   ;;  %v930_v21 = vld [vmem:[%s1606_s4] sm:$0xff]   ;;  %v946_v22 = vld [vmem:[#allocation3] sm:$0xff]   ;;  %v935_v27 = vunpack.c.l.bf16 %v966_v18  ;;  %v936_v34 = vunpack.c.h.bf16 %v966_v18 }
  0x48   : > { %v1437_v2 = vld [vmem:[#allocation2] sm:$0xff]  ;;  %v1439_v3 = vld [vmem:[#allocation2 + $0x8] sm:$0xff]  ;;  %v1487_v25 = vld [vmem:[%s1606_s4 + $0x18] sm:$0xff]   ;;  %v951_v28 = vunpack.c.l.bf16 %v969_v20  ;;  %v931_v29 = vunpack.c.l.bf16 %v930_v21  ;;  %v947_v30 = vunpack.c.l.bf16 %v946_v22  ;;  %v952_v35 = vunpack.c.h.bf16 %v969_v20 }
  0x49   : > { %v360_v4 = vpack.c.bf16 %v1439_v3, %v1437_v2  ;;  %v1491_v31 = vld [vmem:[#allocation3 + $0x18] sm:$0xff]   ;;  %v1496_v32 = vld [vmem:[%s1606_s4 + $0x10] sm:$0xff]   ;;  %v1498_v33 = vld [vmem:[#allocation3 + $0x10] sm:$0xff]   ;;  %v932_v36 = vunpack.c.h.bf16 %v930_v21  ;;  %v948_v37 = vunpack.c.h.bf16 %v946_v22  ;;  %v943_v38 = vunpack.c.l.bf16 %v1487_v25 }
  0x4a   : > { %v959_v39 = vunpack.c.l.bf16 %v1491_v31  ;;  %v939_v40 = vunpack.c.l.bf16 %v1496_v32  ;;  %v955_v41 = vunpack.c.l.bf16 %v1498_v33  ;;  %v960_v5 = vunpack.c.h.bf16 %v1491_v31 }
  0x4b   : > { %991 = vmatprep.subr.bf16.mxu0 %v360_v4 }
  0x4c   : > { %992 = vmatpush3.bf16.msra.mxu0 %v360_v4  ;;  %v944_v4 = vunpack.c.h.bf16 %v1487_v25 }
  0x4f   : > { %994 = vmatmul.mubr.msk.bf16.vlgmr.msra.gmra.mrb[0].mxu0 %vm401_vm0, %v1122_v6 }
  0x50   : > { %997 = vmatprep.mubr.msk.bf16.mxu0 %vm401_vm0, %v1123_v7 }
  0x57   : > { %998 = vmatmul.mubr.msk.bf16.gmra.mrb[4].mxu0 %vm401_vm0, %v1124_v8  ;;  %v940_v8 = vunpack.c.h.bf16 %v1496_v32 }
  0x58   : > { %1001 = vmatprep.mubr.msk.bf16.mxu0 %vm401_vm0, %v1125_v9  ;;  %v956_v9 = vunpack.c.h.bf16 %v1498_v33 }
  0x5f   : > { %1002 = vmatmul.mubr.msk.bf16.gmra.mrb[8].mxu0 %vm401_vm0, %v1126_v10 }
  0x60   : > { %1005 = vmatprep.mubr.msk.bf16.mxu0 %vm401_vm0, %v1127_v11 }
  0x67   : > { %1006 = vmatmul.mubr.msk.bf16.gmra.mrb[12].mxu0 %vm401_vm0, %v1128_v12 }
 0x122   : > { %v995_v14 = vpop.f32.mrb[0].mxu0 }
 0x123   : > { %v460_v15 = vpop.f32.mrb[1].mxu0  ;;  %v557_v42 = vmul.f32 %v995_v14, %v935_v27  ;;  %v581_v43 = vmul.f32 %v995_v14, %v951_v28 }
 0x124   : > { %v996_v16 = vpop.f32.mrb[2].mxu0  ;;  %v555_v44 = vmul.f32 %v931_v29, %v460_v15  ;;  %v579_v45 = vmul.f32 %v947_v30, %v460_v15 }
 0x125   : > { %v463_v17 = vpop.f32.mrb[3].mxu0  ;;  %v558_v47 = vmul.f32 %v996_v16, %v936_v34  ;;  %v582_v48 = vmul.f32 %v996_v16, %v952_v35 }
 0x126   : > { %v556_v52 = vmul.f32 %v932_v36, %v463_v17  ;;  %v580_v53 = vmul.f32 %v948_v37, %v463_v17 }
 0x12a   : > { %v999_v19 = vpop.f32.mrb[4].mxu0 }
 0x12b   : > { %v476_v23 = vpop.f32.mrb[5].mxu0  ;;  %v561_v12 = vmul.f32 %v999_v19, %v943_v38  ;;  %v585_v14 = vmul.f32 %v999_v19, %v959_v39 }
 0x12c   : > { %v1000_v24 = vpop.f32.mrb[6].mxu0  ;;  %v559_v17 = vmul.f32 %v939_v40, %v476_v23  ;;  %v583_v18 = vmul.f32 %v955_v41, %v476_v23 }
 0x12d   : > { %v1489_v26 = vpop.f32.mrb[7].mxu0  ;;  %v562_v25 = vmul.f32 %v1000_v24, %v944_v4 }
 0x12e   : > { %v560_v31 = vmul.f32 %v940_v8, %v1489_v26  ;;  %v584_v32 = vmul.f32 %v956_v9, %v1489_v26 }
 0x132   : > { %v1003_v46 = vpop.f32.mrb[8].mxu0 }
 0x133   : > { %v565_v49 = vmul.f32 %v1003_v46, %v951_v28  ;;  %v589_v50 = vmul.f32 %v1003_v46, %v935_v27  ;;  %v492_v51 = vpop.f32.mrb[9].mxu0  ;;  %v586_v27 = vmul.f32 %v1000_v24, %v960_v5 }
 0x134   : > { %v563_v54 = vmul.f32 %v947_v30, %v492_v51  ;;  %v587_v55 = vmul.f32 %v931_v29, %v492_v51  ;;  %v1004_v56 = vpop.f32.mrb[10].mxu0 }
 0x135   : > { %v573_v57 = vsub.f32 %v557_v42, %v565_v49  ;;  %v597_v58 = vadd.f32 %v589_v50, %v581_v43  ;;  %v566_v59 = vmul.f32 %v1004_v56, %v952_v35  ;;  %v590_v60 = vmul.f32 %v1004_v56, %v936_v34  ;;  %v495_v61 = vpop.f32.mrb[11].mxu0  ;;  %v1129_v49 = vld [vmem:[%s1605_s3] sm:$0xff]  }
 0x136   : > { %v571_v62 = vsub.f32 %v555_v44, %v563_v54  ;;  %v564_v63 = vmul.f32 %v948_v37, %v495_v61  ;;  %v588_v0 = vmul.f32 %v932_v36, %v495_v61  ;;  %v595_v1 = vadd.f32 %v587_v55, %v579_v45  ;;  %v1130_v50 = vld [vmem:[%s1604_s2] sm:$0xff]  }
 0x137   : > { %v574_v6 = vsub.f32 %v558_v47, %v566_v59  ;;  %v598_v7 = vadd.f32 %v590_v60, %v582_v48 }
 0x138   : > { %v572_v10 = vsub.f32 %v556_v52, %v564_v63  ;;  %v596_v11 = vadd.f32 %v588_v0, %v580_v53  ;;  %v722_v63 = vlaneseq }
 0x139   : > { %v606_v15 = vpack.c.bf16 %v574_v6, %v573_v57  ;;  %v612_v16 = vpack.c.bf16 %v598_v7, %v597_v58 }
 0x13a   : > { %v605_v20 = vpack.c.bf16 %v572_v10, %v571_v62  ;;  %v1007_v21 = vpop.f32.mrb[12].mxu0  ;;  %v611_v22 = vpack.c.bf16 %v596_v11, %v595_v1  ;;  %v723_v0 = vand.u32 127, %v722_v63 }
 0x13b   : > { %v569_v28 = vmul.f32 %v1007_v21, %v959_v39  ;;  %v593_v29 = vmul.f32 %v1007_v21, %v943_v38  ;;  %v508_v30 = vpop.f32.mrb[13].mxu0 }
 0x13c   : > { %v567_v33 = vmul.f32 %v955_v41, %v508_v30  ;;  %v591_v34 = vmul.f32 %v939_v40, %v508_v30  ;;  %v1008_v35 = vpop.f32.mrb[14].mxu0  ;;  %1010 = vmatpush3.bf16.msra.mxu1 %v611_v22  ;;  %vm726_vm3 = vcmp.lt.s32.totalorder %v723_v0, 32  ;;  %v916_v22 = vld [vmem:[%s1609_s7] ss:$0 sm:$0xff] }
 0x13d   : > { %v577_v19 = vsub.f32 %v561_v12, %v569_v28  ;;  %v601_v36 = vadd.f32 %v593_v29, %v585_v14  ;;  %v570_v37 = vmul.f32 %v1008_v35, %v960_v5  ;;  %v594_v23 = vmul.f32 %v1008_v35, %v944_v4  ;;  %v511_v42 = vpop.f32.mrb[15].mxu0  ;;  %1011 = vmatprep.subr.bf16.mxu1 %v1266_v13 }
 0x13e   : > { %v575_v43 = vsub.f32 %v559_v17, %v567_v33  ;;  %v599_v24 = vadd.f32 %v591_v34, %v583_v18  ;;  %v568_v39 = vmul.f32 %v956_v9, %v511_v42  ;;  %v592_v38 = vmul.f32 %v940_v8, %v511_v42 }
 0x13f   : > { %v578_v44 = vsub.f32 %v562_v25, %v570_v37  ;;  %v602_v45 = vadd.f32 %v594_v23, %v586_v27  ;;  %v914_v5 = vsel %vm726_vm3, 1.0, %v1266_v13 }
 0x140   : > { %v576_v46 = vsub.f32 %v560_v31, %v568_v39  ;;  %v600_v47 = vadd.f32 %v592_v38, %v584_v32  ;;  %1012 = vmatpush3.bf16.msra.mxu1 %v612_v16 }
 0x141   : > { %v608_v26 = vpack.c.bf16 %v578_v44, %v577_v19  ;;  %1013 = vmatprep.subr.bf16.mxu1 %v1266_v13  ;;  %v614_v40 = vpack.c.bf16 %v602_v45, %v601_v36 }
 0x142   : > { %v607_v41 = vpack.c.bf16 %v576_v46, %v575_v43  ;;  %v613_v48 = vpack.c.bf16 %v600_v47, %v599_v24 }
 0x144   : > { %1014 = vmatpush3.bf16.msra.mxu1 %v613_v48 }
 0x145   : > { %1015 = vmatprep.subr.bf16.mxu1 %v1266_v13 }
 0x148   : > { %1016 = vmatpush3.bf16.msra.mxu1 %v614_v40 }
 0x149   : > { %1021 = vmatprep.subr.bf16.mxu1 %v1266_v13 }
 0x14b   : > { %1018 = vmatmul.mubr.msk.bf16.vlgmr.msra.gmra.mrb[0].mxu1 %vm620_vm2, %v1129_v49 }
 0x14c   : > { %1022 = vmatpush3.bf16.msra.mxu1 %v605_v20  ;;  %1029 = vmatprep.mubr.msk.bf16.mxu1 %vm1267_vm1, %v1266_v13 }
 0x14d   : > { %1023 = vmatprep.subr.bf16.mxu1 %v1266_v13 }
 0x150   : > { %1024 = vmatpush3.bf16.msra.mxu1 %v606_v15 }
 0x151   : > { %1025 = vmatprep.subr.bf16.mxu1 %v1266_v13 }
 0x154   : > { %1026 = vmatpush3.bf16.msra.mxu1 %v607_v41 }
 0x155   : > { %1027 = vmatprep.subr.bf16.mxu1 %v1266_v13  ;;  %v915_v13 = vld [vmem:[%s1608_s6] ss:$0 sm:$0xff] }
 0x158   : > { %1028 = vmatpush3.bf16.msra.mxu1 %v608_v26 }
 0x15b   : > { %1030 = vmatmul.mubr.msk.bf16.vlgmr.msra.gmra.mrb[4].mxu1 %vm620_vm2, %v1130_v50 }
 0x21e   : > { %v658_v51 = vpop.f32.mrb[0].mxu1 }
 0x21f   : > { %v1019_v52 = vpop.f32.mrb[1].mxu1 }
 0x220   : > { %v661_v53 = vpop.f32.mrb[2].mxu1 }
 0x221   : > { %v1020_v54 = vpop.f32.mrb[3].mxu1 }
 0x22e   : > { %v707_v55 = vpop.f32.mrb[4].mxu1 }
 0x22f   : > { %v708_v56 = vadd.f32 %v707_v55, %v658_v51  ;;  %v1031_v57 = vpop.f32.mrb[5].mxu1 }
 0x230   : > { %v710_v58 = vpop.f32.mrb[6].mxu1 }
 0x231   : > { %v711_v59 = vadd.f32 %v710_v58, %v661_v53  ;;  %v1032_v60 = vpop.f32.mrb[7].mxu1  ;;  %v714_v61 = vadd.f32 %v708_v56, %v1437_v2 }
 0x233   : > { %716 = vadd.xlane.f32.xlu0 %v714_v61  ;;  %v715_v62 = vadd.f32 %v711_v59, %v1439_v3 }
 0x237   : > { %718 = vadd.xlane.f32.xlu0 %v715_v62 }
 0x2c0   : > { %v717_v1 = vpop.xlane.xlu0 %716 }
 0x2c1   : > { %v720_v4 = vmul.f32 0.03125, %v717_v1 }
 0x2c3   : > { %v724_v6 = vsub.f32 %v714_v61, %v720_v4 }
 0x2c4   : > { %v719_v7 = vpop.xlane.xlu0 %718 }
 0x2c5   : > { %v721_v8 = vmul.f32 0.03125, %v719_v7  ;;  %v729_v9 = vmul.f32 %v914_v5, %v724_v6 }
 0x2c7   : > { %v725_v10 = vsub.f32 %v715_v62, %v721_v8  ;;  %v731_v11 = vmul.f32 %v729_v9, %v729_v9 }
 0x2c9   : > { %733 = vadd.xlane.f32.xlu1 %v731_v11  ;;  %v730_v12 = vmul.f32 %v914_v5, %v725_v10 }
 0x2cb   : > { %v732_v2 = vmul.f32 %v730_v12, %v730_v12 }
 0x2cd   : > { %735 = vadd.xlane.f32.xlu1 %v732_v2 }
 0x356   : > { %v734_v14 = vpop.xlane.xlu1 %733 }
 0x357   : > { %v737_v3 = vmul.f32 0.03125, %v734_v14 }
 0x359   : > { %v739_v15 = vadd.f32 1e-12, %v737_v3 }
 0x35a   : > { %v736_v16 = vpop.xlane.xlu1 %735 }
 0x35b   : > { %1131 = vrsqrt.f32 %v739_v15  ;;  %v738_v17 = vmul.f32 0.03125, %v736_v16 }
 0x35d   : > { %v740_v18 = vadd.f32 1e-12, %v738_v17 }
 0x35f   : > { %1133 = vrsqrt.f32 %v740_v18 }
 0x365   : > { %v1132_v20 = vpop.eup %1131 }
 0x366   : > { %v743_v21 = vmul.f32 %v1132_v20, %v729_v9 }
 0x368   : > { %v752_v25 = vmul.f32 %v915_v13, %v743_v21  ;;  %766 = sbr.rel (%p917_p10) target bundleno = 881 (0x371), region = 64 }
 0x369   : > { %v1134_v27 = vpop.eup %1133 }
 0x36a   : > { %v761_v28 = vadd.f32 %v916_v22, %v752_v25  ;;  %v744_v29 = vmul.f32 %v1134_v27, %v730_v12 }
 0x36c   : > { %v753_v30 = vmul.f32 %v915_v13, %v744_v29  ;;  %767 = vst [vmem:[#allocation2] sm:$0xff] (!%p917_p10), %v761_v28 }
 0x36e   : > { %v762_v31 = vadd.f32 %v916_v22, %v753_v30 }
 0x370   : > { %768 = vst [vmem:[#allocation2 + $0x8] sm:$0xff] %v762_v31 }
 0x371 PF: > { %v964_v32 = vpack.c.bf16 %v762_v31, %v761_v28  ;;  %s921_s13 = sshll.u32 %s1249_s9, 1  ;;  %s922_s23 = sshll.u32 %s1245_s30, 2 }
 0x372   : > { %s795_s17 = sshll.u32 %s327_s15, 4  ;;  %s792_s26 = sadd.s32 %s922_s23, %s921_s13  ;;  %s1541_s17 = int_to_ptr.vmem [resolvable:$true] %s795_s17 }
 0x373   : > { %965 = vst [vmem:[%s327_s15] sm:$0xff] %v964_v32   ;;  %s923_s24 = sshll.u32 %s792_s26, 6  ;;  %s1550_s14 = scalar_lea.sflag [#allocation5], %s325_s11 }
 0x374   : > { %s1546_s22 = scalar_lea.hbm %s1610_s8, %s923_s24  ;;  %s1163_s30 = scalar_lea.vmem %s1541_s17, 128 }
 0x375   : > { %p1164_p12 = scmp.ne.s32.totalorder %s1541_s17, %s1163_s30  ;;  %p1628_p0 = scmp.ne.s32.totalorder %s1620_s19, 0 }
 0x376   : > { %s1268_s9 = smov [#allocation6]  }
 0x377   : > { %p1165_p2 = pnand %p1164_p12, %p1628_p0  ;;  %s1167_s18 = sshll.u32 %s1268_s9, 4  ;;  %s1168_s18 = int_to_ptr.vmem [resolvable:$false] %s1167_s18 }
 0x378   : > { %s1169_s15 = scalar_lea.vmem %s1168_s18, 256  ;;  %p1170_p6 = scmp.lt.s32.totalorder %s1541_s17, %s1168_s18 }
 0x379   : > { %p1166_p5 = pneg %p1165_p2  ;;  %p1171_p7 = scmp.lt.s32.totalorder %s1169_s15, %s1163_s30 }
 0x37b   : > { %p1172_p9 = por %p1171_p7, %p1170_p6 }
 0x37d   : > { %p1173_p11 = pnand %p1172_p9, %p1166_p5 }
 0x37f   : > { %1176 = shalt.err (!%p1173_p11)
}
 0x380   : > { %s1177_s11 = scalar_lea.hbm %s1546_s22, 128  ;;  %s1181_s26 = scalar_lea.hbm %s1610_s8, 512 }
 0x381   : > { %p1178_p13 = scmp.ne.s32.totalorder %s1546_s22, %s1177_s11  ;;  %p1182_p3 = scmp.lt.u32.totalorder %s1546_s22, %s1610_s8 }
 0x382   : > { %p1183_p8 = scmp.lt.u32.totalorder %s1181_s26, %s1177_s11  ;;  %p1185_p12 = scmp.lt.u32.totalorder %s1177_s11, %s1546_s22 }
 0x383   : > { %p1179_p1 = pnand %p1178_p13, %p1628_p0 }
 0x384   : > { %p1184_p10 = por %p1183_p8, %p1182_p3 }
 0x385   : > { %p1180_p4 = pneg %p1179_p1 }
 0x386   : > { %p1186_p2 = por %p1185_p12, %p1184_p10 }
 0x388   : > { %p1187_p5 = pnand %p1186_p2, %p1180_p4 }
 0x38a   : > { %1190 = shalt.err (!%p1187_p5)
}
 0x38b   : > { %s1269_s21 = smov 64   ;;  %s1270_s30 = smov 4  }
 0x38c   : > { %1037 = dma.vmem_to_hbm [thread:$0]  (%p1628_p0), %s1541_s17, 128, %s1546_s22, %s1550_s14, %s1269_s21, %s1269_s21, %s1270_s30  }
 0x38d PF: > { %p1049_p6 = scmp.ge.s32.totalorder %s1261_s12, 2  ;;  %s810_s9 = sand.u32 1, %s1233_s27  }
 0x38e   : > { %p1629_p7 = scmp.ne.s32.totalorder %s1622_s20, 0  ;;  %s811_s18 = scalar_lea.sflag [#allocation5], %s810_s9 }
 0x390   : > { %p1044_p9 = pnand %p1049_p6, %p1629_p7 }
 0x392   : > { %1228 = dma.done.wait (!%p1044_p9), %s811_s18, 128  }
 0x393   : > { %1230 = vsyncadd (!%p1044_p9), %s811_s18, 4294967168  ;;  %s22_s12 = sadd.s32 1, %s1261_s12   ;;  %s1630_s9 = sld [smem:[#allocation9_spill]] }
 0x394   : > { %p19_p11 = scmp.ge.s32.totalorder %s22_s12, 6   ;;  %s1631_s19 = sld [smem:[#allocation10_spill]] }
 0x395   : > { %s1632_s11 = sld [smem:[#allocation11_spill]]  ;;  %s1633_s27 = smov %s1237_s28 }
 0x396   : > { %s1634_s28 = smov %s1241_s29  ;;  %s1635_s29 = smov %s1395_s25 }
 0x397   : > { %s1636_s30 = smov %s1253_s10  ;;  %21 = sbr.rel (!%p19_p11) target bundleno = 6 (0x6), region = 100 }
 0x39a   : > { %s1637_s10 = smov %s1631_s19 }
 0x39e   :  { %816 = vsyncpa [#allocation4], 1 }
 0x39f   :  { %818 = vsyncpa [#allocation4 + $0x1], 1 }
 0x3a0   :  { %819 = vsyncpa [#allocation5], 1 }
 0x3a1   :  { %821 = vsyncpa [#allocation5 + $0x1], 1 }

// kernel: tpu_custom_call.1
= control target key start
LH: loop header
LB: loop body
LE: loop exit
PB: predicated region body
PF: predicated region fallthrough
CT: control target
= control target key end

     0   :  { %13 = vsyncpa [#allocation4], 0  ;;  %s1602_s0 = inlined_call_operand.vmem [shape: f32[2,16,128], index: 0, kind: input, shape index: {}]   ;;  %s1603_s1 = inlined_call_operand.vmem [shape: bf16[128,16], index: 1, kind: input, shape index: {}]   ;;  %s1604_s2 = inlined_call_operand.vmem [shape: bf16[16,64], index: 2, kind: input, shape index: {}]   ;;  %s1605_s3 = inlined_call_operand.vmem [shape: bf16[16,64], index: 3, kind: input, shape index: {}]   ;;  %s1606_s4 = inlined_call_operand.vmem [shape: bf16[64,128], index: 4, kind: input, shape index: {}]   ;;  %s1607_s5 = inlined_call_operand.hbm [shape: bf16[64,128], index: 5, kind: input, shape index: {}]   ;;  %s1608_s6 = inlined_call_operand.vmem [shape: f32[1,128], index: 6, kind: input, shape index: {}]   ;;  %s1609_s7 = inlined_call_operand.vmem [shape: f32[1,128], index: 7, kind: input, shape index: {}]   ;;  %s1610_s8 = inlined_call_operand.hbm [shape: bf16[2,2,16,128], index: 8, kind: output, shape index: {}]  }
   0x1   :  { %14 = vsyncpa [#allocation5], 0 }
   0x2   :  { %16 = vsyncpa [#allocation5 + $0x1], 0  ;;  %s1316_s27 = smov 0   ;;  %s1318_s28 = smov 0  }
   0x3   :  { %s1320_s29 = smov 0   ;;  %s1322_s30 = smov 0  }
   0x4   :  { %s1324_s9 = smov 0   ;;  %s1326_s10 = smov 0  }
   0x5   :  { %s1328_s11 = smov 0   ;;  %s1330_s12 = smov 0  }
   0x6 LB: > { %1618 = sst [smem:[#allocation9_spill]] %s1257_s11  ;;  %s883_s13 = sadd.s32 4294967295, %s1261_s12   ;;  %s1261_s12 = sphi %s1330_s12, %s22_s12   ;;  %s1257_s11 = sphi %s1328_s11, %s1632_s11   ;;  %s1253_s10 = sphi %s1326_s10, %s1637_s10   ;;  %s1249_s9 = sphi %s1324_s9, %s1630_s9   ;;  %s1245_s30 = sphi %s1322_s30, %s1636_s30   ;;  %s1241_s29 = sphi %s1320_s29, %s1635_s29   ;;  %s1237_s28 = sphi %s1318_s28, %s1634_s28   ;;  %s1233_s27 = sphi %s1316_s27, %s1633_s27  }
   0x7   : > { %s884_s14 = sadd.s32 4294967294, %s1261_s12   ;;  %s31_s15 = sadd.s32 1, %s1253_s10 }
   0x8   : > { %s34_s16 = sadd.s32 1, %s1257_s11  ;;  %p32_p0 = scmp.ge.s32.totalorder %s31_s15, 2 }
   0x9   : > { %s216_s17 = sadd.s32 1, %s1241_s29  ;;  %p226_p1 = scmp.ne.s32.totalorder %s1241_s29, %s1237_s28 }
   0xa   : > { %p227_p2 = scmp.eq.s32.totalorder %s883_s13, 3  ;;  %s1639_s15 = smov (%p32_p0, %s31_s15), 0 }
   0xb   : > { %1619 = sst [smem:[#allocation10_spill]] %s1639_s15  ;;  %s1641_s16 = smov (!%p32_p0, %s34_s16), %s1257_s11 }
   0xc   : > { %s211_s18 = ssub.s32 %s1253_s10, %s1639_s15  ;;  %p1368_p3 = por %p227_p2, %p226_p1 }
   0xd   : > { %p36_p4 = scmp.ge.s32.totalorder %s1641_s16, 2  ;;  %p232_p5 = scmp.ne.s32.totalorder %s1237_s28, %s1233_s27 }
   0xe   : > { %s1620_s19 = scalar_select %p1368_p3, 1, 0 }
   0xf   : > { %p233_p6 = scmp.eq.s32.totalorder %s884_s14, 3  ;;  %p885_p7 = scmp.ge.s32.totalorder %s1261_s12, 1 }
  0x10   : > { %s1643_s16 = smov (%p36_p4, %s1641_s16), 0  ;;  %p240_p9 = scmp.lt.s32.totalorder %s1261_s12, 5 }
  0x11   : > { %1621 = sst [smem:[#allocation11_spill]] %s1643_s16  ;;  %p1377_p8 = por %p233_p6, %p232_p5 }
  0x12   : > { %s212_s21 = ssub.s32 %s1257_s11, %s1643_s16  ;;  %p1384_p10 = pnand %p885_p7, %p240_p9 }
  0x13   : > { %s1622_s20 = scalar_select %p1377_p8, 1, 0 }
  0x14   : > { %s213_s22 = sor.u32 %s212_s21, %s211_s18  ;;  %p1388_p12 = scmp.eq.s32.totalorder %s883_s13, 0 }
  0x15   : > { %s1623_s23 = scalar_select %p1384_p10, 1, 0 }
  0x16   : > { %p214_p11 = scmp.eq.s32.totalorder %s213_s22, 0  ;;  %p1039_p13 = pneg %p1384_p10 }
  0x17   : > { %s1624_s24 = scalar_select %p1388_p12, 1, 0 }
  0x18   : > { %s1395_s25 = scalar_select %p214_p11, %s1241_s29, %s216_s17  }
  0x19   : > { %s1263_s26 = smov [#allocation3]   ;;  %p1399_p0 = pnand %p1388_p12, %p1039_p13 }
  0x1a   : > { %s264_s14 = sshll.u32 %s1263_s26, 4  ;;  %s1135_s13 = scalar_lea.hbm %s1607_s5, 512  ;;  %s265_s14 = int_to_ptr.vmem [resolvable:$true] %s264_s14 }
  0x1b   : > { %p1136_p1 = scmp.ne.s32.totalorder %s1607_s5, %s1135_s13  ;;  %p1137_p2 = pneg %p1399_p0 }
  0x1c   : > { %p1142_p6 = scmp.lt.u32.totalorder %s1135_s13, %s1607_s5 }
  0x1d   : > { %p1138_p4 = pnand %p1137_p2, %p1136_p1 }
  0x1f   : > { %p1139_p5 = pneg %p1138_p4 }
  0x21   : > { %p1144_p7 = pnand %p1142_p6, %p1139_p5 }
  0x23   : > { %1147 = shalt.err (!%p1144_p7)
}
  0x24   : > { %s1148_s11 = scalar_lea.vmem %s265_s14, 512  ;;  %p1156_p8 = scmp.lt.s32.totalorder %s265_s14, %s265_s14 }
  0x25   : > { %p1149_p9 = scmp.ne.s32.totalorder %s265_s14, %s1148_s11  ;;  %p1157_p3 = scmp.lt.s32.totalorder %s1148_s11, %s1148_s11 }
  0x27   : > { %p1151_p11 = pnand %p1149_p9, %p1137_p2  ;;  %p1158_p12 = por %p1157_p3, %p1156_p8 }
  0x29   : > { %p1152_p13 = pneg %p1151_p11 }
  0x2b   : > { %p1159_p10 = pnand %p1158_p12, %p1152_p13 }
  0x2d   : > { %1162 = shalt.err (!%p1159_p10)
}
  0x2e   : > { %s1264_s15 = smov 64   ;;  %s1265_s16 = smov 4  }
  0x2f   : > { %1042 = dma.hbm_to_vmem [thread:$0]  (!%p1399_p0), %s1607_s5, 512, %s265_s14, [#allocation4], %s1264_s15, %s1264_s15, %s1265_s16  }
  0x30   : > { %p1626_p1 = scmp.ne.s32.totalorder %s1623_s23, 0 }
  0x31   : > { %p1627_p4 = scmp.ne.s32.totalorder (!%p1626_p1), %s1624_s24, 0 }
  0x32   : > { %294 = sbr.rel (%p1626_p1) target bundleno = 909 (0x38d), region = 52 }
  0x39   : > { %1224 = dma.done.wait (%p1627_p4), [#allocation4], 512  }
  0x3a   : > { %1226 = vsyncadd (%p1627_p4), [#allocation4], 4294966784  ;;  %s325_s11 = sand.u32 1, %s1237_s28   ;;  %p328_p3 = scmp.lt.s32.totalorder %s1249_s9, 1 }
  0x3b   : > { %s1429_s18 = sshll.u32 %s325_s11, 3  ;;  %p893_p8 = scmp.ne.s32.totalorder %s1245_s30, 0 }
  0x3c   : > { %s329_s14 = scalar_select %p328_p3, %s1249_s9, 1 }
  0x3d   : > { %s327_s15 = scalar_lea.vmem [#allocation6], %s1429_s18  ;;  %337 = sbr.rel (%p893_p8) target bundleno = 68 (0x44), region = 60 }
  0x3e   : > { %s926_s13 = sshll.u32 %s329_s14, 4 }
  0x3f   : > { %s332_s26 = scalar_lea.vmem %s1602_s0, %s926_s13 }
  0x40   : > { %v338_v0 = vld [vmem:[%s332_s26] sm:$0xff] (!%p893_p8)  ;;  %v339_v1 = vld [vmem:[%s332_s26 + $0x8] sm:$0xff] (!%p893_p8) }
  0x41   : > { %340 = vst [vmem:[#allocation2] sm:$0xff] (!%p893_p8), %v338_v0  ;;  %341 = vst [vmem:[#allocation2 + $0x8] sm:$0xff] (!%p893_p8), %v339_v1 }
  0x44 PF: > { %vm401_vm0 = vcmask 130048   ;;  %v1121_v5 = vld [vmem:[%s1603_s1] sm:$0xff]   ;;  %v1122_v6 = vld [vmem:[%s1603_s1 + $0x8] sm:$0xff]   ;;  %v1123_v7 = vld [vmem:[%s1603_s1 + $0x10] sm:$0xff]   ;;  %v1266_v13 = vmov 0.0   ;;  %vm1267_vm1 = vmmov 0  }
  0x45   : > { %993 = vmatprep.mubr.msk.bf16.mxu0 %vm401_vm0, %v1121_v5  ;;  %v1124_v8 = vld [vmem:[%s1603_s1 + $0x18] sm:$0xff]   ;;  %v1125_v9 = vld [vmem:[%s1603_s1 + $0x20] sm:$0xff]   ;;  %v1126_v10 = vld [vmem:[%s1603_s1 + $0x28] sm:$0xff]   ;;  %1009 = vmatprep.subr.bf16.mxu1 %v1266_v13  ;;  %vm620_vm2 = vcmask 523264   ;;  %p917_p10 = scmp.ge.s32.totalorder %s1245_s30, 1 }
  0x46   : > { %v1127_v11 = vld [vmem:[%s1603_s1 + $0x30] sm:$0xff]   ;;  %v1128_v12 = vld [vmem:[%s1603_s1 + $0x38] sm:$0xff]   ;;  %1017 = vmatprep.mubr.msk.bf16.mxu1 %vm1267_vm1, %v1266_v13  ;;  %v966_v18 = vld [vmem:[%s1606_s4 + $0x8] sm:$0xff]  }
  0x47   : > { %v969_v20 = vld [vmem:[#allocation3 + $0x8] sm:$0xff]   ;;  %v930_v21 = vld [vmem:[%s1606_s4] sm:$0xff]   ;;  %v946_v22 = vld [vmem:[#allocation3] sm:$0xff]   ;;  %v935_v27 = vunpack.c.l.bf16 %v966_v18  ;;  %v936_v34 = vunpack.c.h.bf16 %v966_v18 }
  0x48   : > { %v1437_v2 = vld [vmem:[#allocation2] sm:$0xff]  ;;  %v1439_v3 = vld [vmem:[#allocation2 + $0x8] sm:$0xff]  ;;  %v1487_v25 = vld [vmem:[%s1606_s4 + $0x18] sm:$0xff]   ;;  %v951_v28 = vunpack.c.l.bf16 %v969_v20  ;;  %v931_v29 = vunpack.c.l.bf16 %v930_v21  ;;  %v947_v30 = vunpack.c.l.bf16 %v946_v22  ;;  %v952_v35 = vunpack.c.h.bf16 %v969_v20 }
  0x49   : > { %v360_v4 = vpack.c.bf16 %v1439_v3, %v1437_v2  ;;  %v1491_v31 = vld [vmem:[#allocation3 + $0x18] sm:$0xff]   ;;  %v1496_v32 = vld [vmem:[%s1606_s4 + $0x10] sm:$0xff]   ;;  %v1498_v33 = vld [vmem:[#allocation3 + $0x10] sm:$0xff]   ;;  %v932_v36 = vunpack.c.h.bf16 %v930_v21  ;;  %v948_v37 = vunpack.c.h.bf16 %v946_v22  ;;  %v943_v38 = vunpack.c.l.bf16 %v1487_v25 }
  0x4a   : > { %v959_v39 = vunpack.c.l.bf16 %v1491_v31  ;;  %v939_v40 = vunpack.c.l.bf16 %v1496_v32  ;;  %v955_v41 = vunpack.c.l.bf16 %v1498_v33  ;;  %v960_v5 = vunpack.c.h.bf16 %v1491_v31 }
  0x4b   : > { %991 = vmatprep.subr.bf16.mxu0 %v360_v4 }
  0x4c   : > { %992 = vmatpush3.bf16.msra.mxu0 %v360_v4  ;;  %v944_v4 = vunpack.c.h.bf16 %v1487_v25 }
  0x4f   : > { %994 = vmatmul.mubr.msk.bf16.vlgmr.msra.gmra.mrb[0].mxu0 %vm401_vm0, %v1122_v6 }
  0x50   : > { %997 = vmatprep.mubr.msk.bf16.mxu0 %vm401_vm0, %v1123_v7 }
  0x57   : > { %998 = vmatmul.mubr.msk.bf16.gmra.mrb[4].mxu0 %vm401_vm0, %v1124_v8  ;;  %v940_v8 = vunpack.c.h.bf16 %v1496_v32 }
  0x58   : > { %1001 = vmatprep.mubr.msk.bf16.mxu0 %vm401_vm0, %v1125_v9  ;;  %v956_v9 = vunpack.c.h.bf16 %v1498_v33 }
  0x5f   : > { %1002 = vmatmul.mubr.msk.bf16.gmra.mrb[8].mxu0 %vm401_vm0, %v1126_v10 }
  0x60   : > { %1005 = vmatprep.mubr.msk.bf16.mxu0 %vm401_vm0, %v1127_v11 }
  0x67   : > { %1006 = vmatmul.mubr.msk.bf16.gmra.mrb[12].mxu0 %vm401_vm0, %v1128_v12 }
 0x122   : > { %v995_v14 = vpop.f32.mrb[0].mxu0 }
 0x123   : > { %v460_v15 = vpop.f32.mrb[1].mxu0  ;;  %v557_v42 = vmul.f32 %v995_v14, %v935_v27  ;;  %v581_v43 = vmul.f32 %v995_v14, %v951_v28 }
 0x124   : > { %v996_v16 = vpop.f32.mrb[2].mxu0  ;;  %v555_v44 = vmul.f32 %v931_v29, %v460_v15  ;;  %v579_v45 = vmul.f32 %v947_v30, %v460_v15 }
 0x125   : > { %v463_v17 = vpop.f32.mrb[3].mxu0  ;;  %v558_v47 = vmul.f32 %v996_v16, %v936_v34  ;;  %v582_v48 = vmul.f32 %v996_v16, %v952_v35 }
 0x126   : > { %v556_v52 = vmul.f32 %v932_v36, %v463_v17  ;;  %v580_v53 = vmul.f32 %v948_v37, %v463_v17 }
 0x12a   : > { %v999_v19 = vpop.f32.mrb[4].mxu0 }
 0x12b   : > { %v476_v23 = vpop.f32.mrb[5].mxu0  ;;  %v561_v12 = vmul.f32 %v999_v19, %v943_v38  ;;  %v585_v14 = vmul.f32 %v999_v19, %v959_v39 }
 0x12c   : > { %v1000_v24 = vpop.f32.mrb[6].mxu0  ;;  %v559_v17 = vmul.f32 %v939_v40, %v476_v23  ;;  %v583_v18 = vmul.f32 %v955_v41, %v476_v23 }
 0x12d   : > { %v1489_v26 = vpop.f32.mrb[7].mxu0  ;;  %v562_v25 = vmul.f32 %v1000_v24, %v944_v4 }
 0x12e   : > { %v560_v31 = vmul.f32 %v940_v8, %v1489_v26  ;;  %v584_v32 = vmul.f32 %v956_v9, %v1489_v26 }
 0x132   : > { %v1003_v46 = vpop.f32.mrb[8].mxu0 }
 0x133   : > { %v565_v49 = vmul.f32 %v1003_v46, %v951_v28  ;;  %v589_v50 = vmul.f32 %v1003_v46, %v935_v27  ;;  %v492_v51 = vpop.f32.mrb[9].mxu0  ;;  %v586_v27 = vmul.f32 %v1000_v24, %v960_v5 }
 0x134   : > { %v563_v54 = vmul.f32 %v947_v30, %v492_v51  ;;  %v587_v55 = vmul.f32 %v931_v29, %v492_v51  ;;  %v1004_v56 = vpop.f32.mrb[10].mxu0 }
 0x135   : > { %v573_v57 = vsub.f32 %v557_v42, %v565_v49  ;;  %v597_v58 = vadd.f32 %v589_v50, %v581_v43  ;;  %v566_v59 = vmul.f32 %v1004_v56, %v952_v35  ;;  %v590_v60 = vmul.f32 %v1004_v56, %v936_v34  ;;  %v495_v61 = vpop.f32.mrb[11].mxu0  ;;  %v1129_v49 = vld [vmem:[%s1605_s3] sm:$0xff]  }
 0x136   : > { %v571_v62 = vsub.f32 %v555_v44, %v563_v54  ;;  %v564_v63 = vmul.f32 %v948_v37, %v495_v61  ;;  %v588_v0 = vmul.f32 %v932_v36, %v495_v61  ;;  %v595_v1 = vadd.f32 %v587_v55, %v579_v45  ;;  %v1130_v50 = vld [vmem:[%s1604_s2] sm:$0xff]  }
 0x137   : > { %v574_v6 = vsub.f32 %v558_v47, %v566_v59  ;;  %v598_v7 = vadd.f32 %v590_v60, %v582_v48 }
 0x138   : > { %v572_v10 = vsub.f32 %v556_v52, %v564_v63  ;;  %v596_v11 = vadd.f32 %v588_v0, %v580_v53  ;;  %v722_v63 = vlaneseq }
 0x139   : > { %v606_v15 = vpack.c.bf16 %v574_v6, %v573_v57  ;;  %v612_v16 = vpack.c.bf16 %v598_v7, %v597_v58 }
 0x13a   : > { %v605_v20 = vpack.c.bf16 %v572_v10, %v571_v62  ;;  %v1007_v21 = vpop.f32.mrb[12].mxu0  ;;  %v611_v22 = vpack.c.bf16 %v596_v11, %v595_v1  ;;  %v723_v0 = vand.u32 127, %v722_v63 }
 0x13b   : > { %v569_v28 = vmul.f32 %v1007_v21, %v959_v39  ;;  %v593_v29 = vmul.f32 %v1007_v21, %v943_v38  ;;  %v508_v30 = vpop.f32.mrb[13].mxu0 }
 0x13c   : > { %v567_v33 = vmul.f32 %v955_v41, %v508_v30  ;;  %v591_v34 = vmul.f32 %v939_v40, %v508_v30  ;;  %v1008_v35 = vpop.f32.mrb[14].mxu0  ;;  %1010 = vmatpush3.bf16.msra.mxu1 %v611_v22  ;;  %vm726_vm3 = vcmp.lt.s32.totalorder %v723_v0, 32  ;;  %v916_v22 = vld [vmem:[%s1609_s7] ss:$0 sm:$0xff] }
 0x13d   : > { %v577_v19 = vsub.f32 %v561_v12, %v569_v28  ;;  %v601_v36 = vadd.f32 %v593_v29, %v585_v14  ;;  %v570_v37 = vmul.f32 %v1008_v35, %v960_v5  ;;  %v594_v23 = vmul.f32 %v1008_v35, %v944_v4  ;;  %v511_v42 = vpop.f32.mrb[15].mxu0  ;;  %1011 = vmatprep.subr.bf16.mxu1 %v1266_v13 }
 0x13e   : > { %v575_v43 = vsub.f32 %v559_v17, %v567_v33  ;;  %v599_v24 = vadd.f32 %v591_v34, %v583_v18  ;;  %v568_v39 = vmul.f32 %v956_v9, %v511_v42  ;;  %v592_v38 = vmul.f32 %v940_v8, %v511_v42 }
 0x13f   : > { %v578_v44 = vsub.f32 %v562_v25, %v570_v37  ;;  %v602_v45 = vadd.f32 %v594_v23, %v586_v27  ;;  %v914_v5 = vsel %vm726_vm3, 1.0, %v1266_v13 }
 0x140   : > { %v576_v46 = vsub.f32 %v560_v31, %v568_v39  ;;  %v600_v47 = vadd.f32 %v592_v38, %v584_v32  ;;  %1012 = vmatpush3.bf16.msra.mxu1 %v612_v16 }
 0x141   : > { %v608_v26 = vpack.c.bf16 %v578_v44, %v577_v19  ;;  %1013 = vmatprep.subr.bf16.mxu1 %v1266_v13  ;;  %v614_v40 = vpack.c.bf16 %v602_v45, %v601_v36 }
 0x142   : > { %v607_v41 = vpack.c.bf16 %v576_v46, %v575_v43  ;;  %v613_v48 = vpack.c.bf16 %v600_v47, %v599_v24 }
 0x144   : > { %1014 = vmatpush3.bf16.msra.mxu1 %v613_v48 }
 0x145   : > { %1015 = vmatprep.subr.bf16.mxu1 %v1266_v13 }
 0x148   : > { %1016 = vmatpush3.bf16.msra.mxu1 %v614_v40 }
 0x149   : > { %1021 = vmatprep.subr.bf16.mxu1 %v1266_v13 }
 0x14b   : > { %1018 = vmatmul.mubr.msk.bf16.vlgmr.msra.gmra.mrb[0].mxu1 %vm620_vm2, %v1129_v49 }
 0x14c   : > { %1022 = vmatpush3.bf16.msra.mxu1 %v605_v20  ;;  %1029 = vmatprep.mubr.msk.bf16.mxu1 %vm1267_vm1, %v1266_v13 }
 0x14d   : > { %1023 = vmatprep.subr.bf16.mxu1 %v1266_v13 }
 0x150   : > { %1024 = vmatpush3.bf16.msra.mxu1 %v606_v15 }
 0x151   : > { %1025 = vmatprep.subr.bf16.mxu1 %v1266_v13 }
 0x154   : > { %1026 = vmatpush3.bf16.msra.mxu1 %v607_v41 }
 0x155   : > { %1027 = vmatprep.subr.bf16.mxu1 %v1266_v13  ;;  %v915_v13 = vld [vmem:[%s1608_s6] ss:$0 sm:$0xff] }
 0x158   : > { %1028 = vmatpush3.bf16.msra.mxu1 %v608_v26 }
 0x15b   : > { %1030 = vmatmul.mubr.msk.bf16.vlgmr.msra.gmra.mrb[4].mxu1 %vm620_vm2, %v1130_v50 }
 0x21e   : > { %v658_v51 = vpop.f32.mrb[0].mxu1 }
 0x21f   : > { %v1019_v52 = vpop.f32.mrb[1].mxu1 }
 0x220   : > { %v661_v53 = vpop.f32.mrb[2].mxu1 }
 0x221   : > { %v1020_v54 = vpop.f32.mrb[3].mxu1 }
 0x22e   : > { %v707_v55 = vpop.f32.mrb[4].mxu1 }
 0x22f   : > { %v708_v56 = vadd.f32 %v707_v55, %v658_v51  ;;  %v1031_v57 = vpop.f32.mrb[5].mxu1 }
 0x230   : > { %v710_v58 = vpop.f32.mrb[6].mxu1 }
 0x231   : > { %v711_v59 = vadd.f32 %v710_v58, %v661_v53  ;;  %v1032_v60 = vpop.f32.mrb[7].mxu1  ;;  %v714_v61 = vadd.f32 %v708_v56, %v1437_v2 }
 0x233   : > { %716 = vadd.xlane.f32.xlu0 %v714_v61  ;;  %v715_v62 = vadd.f32 %v711_v59, %v1439_v3 }
 0x237   : > { %718 = vadd.xlane.f32.xlu0 %v715_v62 }
 0x2c0   : > { %v717_v1 = vpop.xlane.xlu0 %716 }
 0x2c1   : > { %v720_v4 = vmul.f32 0.03125, %v717_v1 }
 0x2c3   : > { %v724_v6 = vsub.f32 %v714_v61, %v720_v4 }
 0x2c4   : > { %v719_v7 = vpop.xlane.xlu0 %718 }
 0x2c5   : > { %v721_v8 = vmul.f32 0.03125, %v719_v7  ;;  %v729_v9 = vmul.f32 %v914_v5, %v724_v6 }
 0x2c7   : > { %v725_v10 = vsub.f32 %v715_v62, %v721_v8  ;;  %v731_v11 = vmul.f32 %v729_v9, %v729_v9 }
 0x2c9   : > { %733 = vadd.xlane.f32.xlu1 %v731_v11  ;;  %v730_v12 = vmul.f32 %v914_v5, %v725_v10 }
 0x2cb   : > { %v732_v2 = vmul.f32 %v730_v12, %v730_v12 }
 0x2cd   : > { %735 = vadd.xlane.f32.xlu1 %v732_v2 }
 0x356   : > { %v734_v14 = vpop.xlane.xlu1 %733 }
 0x357   : > { %v737_v3 = vmul.f32 0.03125, %v734_v14 }
 0x359   : > { %v739_v15 = vadd.f32 1e-12, %v737_v3 }
 0x35a   : > { %v736_v16 = vpop.xlane.xlu1 %735 }
 0x35b   : > { %1131 = vrsqrt.f32 %v739_v15  ;;  %v738_v17 = vmul.f32 0.03125, %v736_v16 }
 0x35d   : > { %v740_v18 = vadd.f32 1e-12, %v738_v17 }
 0x35f   : > { %1133 = vrsqrt.f32 %v740_v18 }
 0x365   : > { %v1132_v20 = vpop.eup %1131 }
 0x366   : > { %v743_v21 = vmul.f32 %v1132_v20, %v729_v9 }
 0x368   : > { %v752_v25 = vmul.f32 %v915_v13, %v743_v21  ;;  %766 = sbr.rel (%p917_p10) target bundleno = 881 (0x371), region = 64 }
 0x369   : > { %v1134_v27 = vpop.eup %1133 }
 0x36a   : > { %v761_v28 = vadd.f32 %v916_v22, %v752_v25  ;;  %v744_v29 = vmul.f32 %v1134_v27, %v730_v12 }
 0x36c   : > { %v753_v30 = vmul.f32 %v915_v13, %v744_v29  ;;  %767 = vst [vmem:[#allocation2] sm:$0xff] (!%p917_p10), %v761_v28 }
 0x36e   : > { %v762_v31 = vadd.f32 %v916_v22, %v753_v30 }
 0x370   : > { %768 = vst [vmem:[#allocation2 + $0x8] sm:$0xff] %v762_v31 }
 0x371 PF: > { %v964_v32 = vpack.c.bf16 %v762_v31, %v761_v28  ;;  %s921_s13 = sshll.u32 %s1249_s9, 1  ;;  %s922_s23 = sshll.u32 %s1245_s30, 2 }
 0x372   : > { %s795_s17 = sshll.u32 %s327_s15, 4  ;;  %s792_s26 = sadd.s32 %s922_s23, %s921_s13  ;;  %s1541_s17 = int_to_ptr.vmem [resolvable:$true] %s795_s17 }
 0x373   : > { %965 = vst [vmem:[%s327_s15] sm:$0xff] %v964_v32   ;;  %s923_s24 = sshll.u32 %s792_s26, 6  ;;  %s1550_s14 = scalar_lea.sflag [#allocation5], %s325_s11 }
 0x374   : > { %s1546_s22 = scalar_lea.hbm %s1610_s8, %s923_s24  ;;  %s1163_s30 = scalar_lea.vmem %s1541_s17, 128 }
 0x375   : > { %p1164_p12 = scmp.ne.s32.totalorder %s1541_s17, %s1163_s30  ;;  %p1628_p0 = scmp.ne.s32.totalorder %s1620_s19, 0 }
 0x376   : > { %s1268_s9 = smov [#allocation6]  }
 0x377   : > { %p1165_p2 = pnand %p1164_p12, %p1628_p0  ;;  %s1167_s18 = sshll.u32 %s1268_s9, 4  ;;  %s1168_s18 = int_to_ptr.vmem [resolvable:$false] %s1167_s18 }
 0x378   : > { %s1169_s15 = scalar_lea.vmem %s1168_s18, 256  ;;  %p1170_p6 = scmp.lt.s32.totalorder %s1541_s17, %s1168_s18 }
 0x379   : > { %p1166_p5 = pneg %p1165_p2  ;;  %p1171_p7 = scmp.lt.s32.totalorder %s1169_s15, %s1163_s30 }
 0x37b   : > { %p1172_p9 = por %p1171_p7, %p1170_p6 }
 0x37d   : > { %p1173_p11 = pnand %p1172_p9, %p1166_p5 }
 0x37f   : > { %1176 = shalt.err (!%p1173_p11)
}
 0x380   : > { %s1177_s11 = scalar_lea.hbm %s1546_s22, 128  ;;  %s1181_s26 = scalar_lea.hbm %s1610_s8, 512 }
 0x381   : > { %p1178_p13 = scmp.ne.s32.totalorder %s1546_s22, %s1177_s11  ;;  %p1182_p3 = scmp.lt.u32.totalorder %s1546_s22, %s1610_s8 }
 0x382   : > { %p1183_p8 = scmp.lt.u32.totalorder %s1181_s26, %s1177_s11  ;;  %p1185_p12 = scmp.lt.u32.totalorder %s1177_s11, %s1546_s22 }
 0x383   : > { %p1179_p1 = pnand %p1178_p13, %p1628_p0 }
 0x384   : > { %p1184_p10 = por %p1183_p8, %p1182_p3 }
 0x385   : > { %p1180_p4 = pneg %p1179_p1 }
 0x386   : > { %p1186_p2 = por %p1185_p12, %p1184_p10 }
 0x388   : > { %p1187_p5 = pnand %p1186_p2, %p1180_p4 }
 0x38a   : > { %1190 = shalt.err (!%p1187_p5)
}
 0x38b   : > { %s1269_s21 = smov 64   ;;  %s1270_s30 = smov 4  }
 0x38c   : > { %1037 = dma.vmem_to_hbm [thread:$0]  (%p1628_p0), %s1541_s17, 128, %s1546_s22, %s1550_s14, %s1269_s21, %s1269_s21, %s1270_s30  }
 0x38d PF: > { %p1049_p6 = scmp.ge.s32.totalorder %s1261_s12, 2  ;;  %s810_s9 = sand.u32 1, %s1233_s27  }
 0x38e   : > { %p1629_p7 = scmp.ne.s32.totalorder %s1622_s20, 0  ;;  %s811_s18 = scalar_lea.sflag [#allocation5], %s810_s9 }
 0x390   : > { %p1044_p9 = pnand %p1049_p6, %p1629_p7 }
 0x392   : > { %1228 = dma.done.wait (!%p1044_p9), %s811_s18, 128  }
 0x393   : > { %1230 = vsyncadd (!%p1044_p9), %s811_s18, 4294967168  ;;  %s22_s12 = sadd.s32 1, %s1261_s12   ;;  %s1630_s9 = sld [smem:[#allocation9_spill]] }
 0x394   : > { %p19_p11 = scmp.ge.s32.totalorder %s22_s12, 6   ;;  %s1631_s19 = sld [smem:[#allocation10_spill]] }
 0x395   : > { %s1632_s11 = sld [smem:[#allocation11_spill]]  ;;  %s1633_s27 = smov %s1237_s28 }
 0x396   : > { %s1634_s28 = smov %s1241_s29  ;;  %s1635_s29 = smov %s1395_s25 }
 0x397   : > { %s1636_s30 = smov %s1253_s10  ;;  %21 = sbr.rel (!%p19_p11) target bundleno = 6 (0x6), region = 100 }
 0x39a   : > { %s1637_s10 = smov %s1631_s19 }
 0x39e   :  { %816 = vsyncpa [#allocation4], 1 }
 0x39f   :  { %818 = vsyncpa [#allocation4 + $0x1], 1 }
 0x3a0   :  { %819 = vsyncpa [#allocation5], 1 }
 0x3a1   :  { %821 = vsyncpa [#allocation5 + $0x1], 1 }

</bundles_post_ra>
